<compile_context>
chip_gen: v7x
topology: tpu7x:2x2x1
jax: 0.10.0
libtpu: 0.0.40
codegen_flags: <defaults>
</compile_context>

<pallas_src>
import functools
import math

import jax
import jax.numpy as jnp
from jax.experimental import pallas as pl
from jax.experimental.pallas import tpu as pltpu


# ----------------------------------------------------------------------------
# Fused BERT encoder-layer kernel: grid = (batch, layer); h resident in VMEM.
# ----------------------------------------------------------------------------
def _encoder_layer_kernel(
    emb_ref, bias_ref, eg_ref, eb_ref,
    wqkv_ref, bqkv_ref, wo_ref, bo_ref, ln1g_ref, ln1b_ref,
    wi_ref, bi_ref, wo2_ref, bo2_ref, ln2g_ref, ln2b_ref,
    out_ref, h_scr, *, num_heads,
):
    l = pl.program_id(1)
    n_layers = pl.num_programs(1)

    def layer_norm(x, g, b):
        mu = jnp.mean(x, axis=-1, keepdims=True)
        var = jnp.mean((x - mu) ** 2, axis=-1, keepdims=True)
        return (x - mu) * jax.lax.rsqrt(var + 1e-12) * g + b

    # Embedding LayerNorm once per batch element, at the first layer step.
    @pl.when(l == 0)
    def _():
        h_scr[...] = layer_norm(emb_ref[0], eg_ref[...], eb_ref[...])

    h = h_scr[...]                                   # [S, H] f32, VMEM-resident
    S, H = h.shape
    dh = H // num_heads
    scale = 1.0 / math.sqrt(dh)

    # ---- fused QKV projection (bf16 operands, f32 accumulation on the MXU) --
    qkv = jnp.dot(h.astype(jnp.bfloat16), wqkv_ref[0],
                  preferred_element_type=jnp.float32) + bqkv_ref[0]   # [S, 3H]

    bias = bias_ref[0]                               # [1, S] additive key mask

    ctx_heads = []
    for hh in range(num_heads):                      # statically unrolled
        qh = qkv[:, hh * dh:(hh + 1) * dh]
        kh = qkv[:, H + hh * dh:H + (hh + 1) * dh]
        vh = qkv[:, 2 * H + hh * dh:2 * H + (hh + 1) * dh]
        # q @ k^T via dot_general (no explicit transpose materialized).
        s = jax.lax.dot_general(
            qh.astype(jnp.bfloat16), kh.astype(jnp.bfloat16),
            dimension_numbers=(((1,), (1,)), ((), ())),
            preferred_element_type=jnp.float32) * scale               # [S, S]
        s = s + bias                                 # f32 mask add / softmax
        m = jnp.max(s, axis=-1, keepdims=True)
        p = jnp.exp(s - m)
        p = p * pl.reciprocal(jnp.sum(p, axis=-1, keepdims=True), approx=True)
        ctx_heads.append(
            jnp.dot(p.astype(jnp.bfloat16), vh.astype(jnp.bfloat16),
                    preferred_element_type=jnp.float32))              # [S, dh]
    ctx = jnp.concatenate(ctx_heads, axis=-1)        # [S, H]

    attn_out = jnp.dot(ctx.astype(jnp.bfloat16), wo_ref[0],
                       preferred_element_type=jnp.float32) + bo_ref[0]
    h1 = layer_norm(h + attn_out, ln1g_ref[0], ln1b_ref[0])

    inter = jnp.dot(h1.astype(jnp.bfloat16), wi_ref[0],
                    preferred_element_type=jnp.float32) + bi_ref[0]
    # TODO(synk): exact (erf) GELU approximated with the tanh form (EUP path).
    inter = jax.nn.gelu(inter, approximate=True)
    ffn_out = jnp.dot(inter.astype(jnp.bfloat16), wo2_ref[0],
                      preferred_element_type=jnp.float32) + bo2_ref[0]
    h2 = layer_norm(h1 + ffn_out, ln2g_ref[0], ln2b_ref[0])

    h_scr[...] = h2

    @pl.when(l == n_layers - 1)
    def _():
        out_ref[0] = h2


def bert_encoder(params, emb, mask_bias, cfg):
    """emb: [B, S, H] f32 (sum of word/pos/type embeddings, pre-LayerNorm).
       mask_bias: [B, 1, S] f32 additive key-padding bias ((mask-1)*1e9)."""
    B, S, H = emb.shape
    nH = cfg["heads"]
    I = cfg["intermediate"]
    layers = params["layers"]
    n_layers = len(layers)
    dh = H // nH

    # Stack per-layer weights -> one pipelined input each; matmul weights bf16.
    wqkv = jnp.stack([jnp.concatenate([l["wq"], l["wk"], l["wv"]], axis=1)
                      for l in layers]).astype(jnp.bfloat16)        # [L, H, 3H]
    bqkv = jnp.stack([jnp.concatenate([l["bq"], l["bk"], l["bv"]])
                      for l in layers])[:, None, :]                 # [L, 1, 3H]
    wo = jnp.stack([l["wo"] for l in layers]).astype(jnp.bfloat16)  # [L, H, H]
    bo = jnp.stack([l["bo"] for l in layers])[:, None, :]
    ln1g = jnp.stack([l["ln1_g"] for l in layers])[:, None, :]
    ln1b = jnp.stack([l["ln1_b"] for l in layers])[:, None, :]
    wi = jnp.stack([l["wi"] for l in layers]).astype(jnp.bfloat16)  # [L, H, I]
    bi = jnp.stack([l["bi"] for l in layers])[:, None, :]
    wo2 = jnp.stack([l["wo2"] for l in layers]).astype(jnp.bfloat16)  # [L, I, H]
    bo2 = jnp.stack([l["bo2"] for l in layers])[:, None, :]
    ln2g = jnp.stack([l["ln2_g"] for l in layers])[:, None, :]
    ln2b = jnp.stack([l["ln2_b"] for l in layers])[:, None, :]
    eg = params["emb_ln_g"].reshape(1, H)
    eb = params["emb_ln_b"].reshape(1, H)

    flops = B * n_layers * (2 * S * H * 3 * H + 4 * nH * S * S * dh
                            + 2 * S * H * H + 4 * S * H * I)
    transcendentals = B * n_layers * (nH * S * S + S * I)
    bytes_accessed = int(
        4 * emb.size + 4 * B * S * H + 4 * mask_bias.size
        + B * (2 * (wqkv.size + wo.size + wi.size + wo2.size)
               + 4 * (bqkv.size + bo.size + bi.size + bo2.size
                      + ln1g.size + ln1b.size + ln2g.size + ln2b.size
                      + eg.size + eb.size)))

    kern = functools.partial(_encoder_layer_kernel, num_heads=nH)
    grid_spec = pltpu.PrefetchScalarGridSpec(
        num_scalar_prefetch=0,
        grid=(B, n_layers),
        in_specs=[
            pl.BlockSpec((1, S, H), lambda b, l: (b, 0, 0)),        # emb
            pl.BlockSpec((1, 1, S), lambda b, l: (b, 0, 0)),        # mask bias
            pl.BlockSpec((1, H), lambda b, l: (0, 0)),              # emb LN g
            pl.BlockSpec((1, H), lambda b, l: (0, 0)),              # emb LN b
            pl.BlockSpec((1, H, 3 * H), lambda b, l: (l, 0, 0)),    # wqkv
            pl.BlockSpec((1, 1, 3 * H), lambda b, l: (l, 0, 0)),    # bqkv
            pl.BlockSpec((1, H, H), lambda b, l: (l, 0, 0)),        # wo
            pl.BlockSpec((1, 1, H), lambda b, l: (l, 0, 0)),        # bo
            pl.BlockSpec((1, 1, H), lambda b, l: (l, 0, 0)),        # ln1 g
            pl.BlockSpec((1, 1, H), lambda b, l: (l, 0, 0)),        # ln1 b
            pl.BlockSpec((1, H, I), lambda b, l: (l, 0, 0)),        # wi
            pl.BlockSpec((1, 1, I), lambda b, l: (l, 0, 0)),        # bi
            pl.BlockSpec((1, I, H), lambda b, l: (l, 0, 0)),        # wo2
            pl.BlockSpec((1, 1, H), lambda b, l: (l, 0, 0)),        # bo2
            pl.BlockSpec((1, 1, H), lambda b, l: (l, 0, 0)),        # ln2 g
            pl.BlockSpec((1, 1, H), lambda b, l: (l, 0, 0)),        # ln2 b
        ],
        out_specs=pl.BlockSpec((1, S, H), lambda b, l: (b, 0, 0)),
        scratch_shapes=[pltpu.VMEM((S, H), jnp.float32)],
    )
    return pl.pallas_call(
        kern,
        out_shape=jax.ShapeDtypeStruct((B, S, H), jnp.float32),
        grid_spec=grid_spec,
        compiler_params=pltpu.CompilerParams(
            dimension_semantics=("parallel", "arbitrary")),
        cost_estimate=pl.CostEstimate(flops=flops,
                                      transcendentals=transcendentals,
                                      bytes_accessed=bytes_accessed),
    )(emb, mask_bias, eg, eb, wqkv, bqkv, wo, bo, ln1g, ln1b,
      wi, bi, wo2, bo2, ln2g, ln2b)


# ----------------------------------------------------------------------------
# Fused classifier + distant-supervision loss kernel (logits never re-read).
# ----------------------------------------------------------------------------
def _cls_loss_kernel(x_ref, wc_ref, bc_ref, lab_ref, msk_ref,
                     logits_ref, loss_ref, seq_ref, *, B, S, mi_pos, mi_neg):
    x = x_ref[...]                                   # [B*S, H] f32
    logits = jnp.dot(x.astype(jnp.bfloat16), wc_ref[...],
                     preferred_element_type=jnp.float32) + bc_ref[...]  # [BS,L]
    logits_ref[...] = logits                         # single narrow HBM write

    BS, L = logits.shape
    labels = lab_ref[...]                            # [BS, 1] i32
    amask = msk_ref[...]                             # [BS, 1] i32

    # label_logits = logits[i, labels[i]]  (one-hot gather on the VPU)
    lab_iota = jax.lax.broadcasted_iota(jnp.int32, (BS, L), 1)
    onehot = (lab_iota == labels).astype(jnp.float32)
    label_logits = jnp.sum(logits * onehot, axis=1, keepdims=True)   # [BS, 1]

    mx = jnp.max(logits, axis=1, keepdims=True)
    normalizer = mx + jnp.log(jnp.sum(jnp.exp(logits - mx), axis=1, keepdims=True))
    lln = jnp.where(amask == 1, label_logits - normalizer, 0.0)      # [BS, 1]

    # Per-bag (per batch row) segment sums via one tiny MXU matmul:
    # seg[b, i] = 1 if i belongs to sequence b.
    row_iota = jax.lax.broadcasted_iota(jnp.int32, (B, BS), 0)
    col_iota = jax.lax.broadcasted_iota(jnp.int32, (B, BS), 1)
    seg = ((col_iota >= row_iota * S)
           & (col_iota < (row_iota + 1) * S)).astype(jnp.float32)    # [B, BS]
    pos_flat = (labels > 1).astype(jnp.float32)                      # [BS, 1]
    summed = jnp.dot(seg, jnp.concatenate([lln, pos_flat], axis=1),
                     preferred_element_type=jnp.float32)             # [B, 2]
    seq_logits = summed[:, 0:1]                                      # [B, 1]
    seq_ref[...] = seq_logits

    # positive = any label in {B(2), I(3)}; LABELS == ['O','X','B','I']
    pos_mask = summed[:, 1:2] > 0.0                                  # [B, 1]
    neg_mask = jnp.logical_not(pos_mask)
    pos_any = jnp.sum(pos_mask.astype(jnp.float32)) > 0.0
    neg_any = jnp.sum(neg_mask.astype(jnp.float32)) > 0.0

    def masked_lse(vals, msk):
        neg_big = jnp.float32(-1e30)
        xm = jnp.where(msk, vals, neg_big)
        m = jnp.max(xm)
        e = jnp.where(msk, jnp.exp(xm - m), 0.0)
        # clamp empty-bag sum so the dead branch stays finite (no inf/NaN)
        return m + jnp.log(jnp.maximum(jnp.sum(e), jnp.float32(1e-30)))

    if mi_pos:
        positive_loss = -masked_lse(seq_logits, pos_mask)
    else:
        positive_loss = masked_lse(-seq_logits, pos_mask)
    if mi_neg:
        negative_loss = -masked_lse(seq_logits, neg_mask)
    else:
        negative_loss = masked_lse(-seq_logits, neg_mask)

    loss = (jnp.where(pos_any, positive_loss, 0.0)
            + jnp.where(neg_any, negative_loss, 0.0))
    loss_ref[...] = jnp.reshape(loss, (1, 1))


def classifier_and_loss(seq_out, wc, bc, labels, attention_mask, *, mi_pos, mi_neg):
    B, S, H = seq_out.shape
    L = wc.shape[1]
    x = seq_out.reshape(B * S, H)
    lab = labels.reshape(B * S, 1).astype(jnp.int32)
    msk = attention_mask.reshape(B * S, 1).astype(jnp.int32)
    kern = functools.partial(_cls_loss_kernel, B=B, S=S,
                             mi_pos=mi_pos, mi_neg=mi_neg)
    logits2d, loss, seq = pl.pallas_call(
        kern,
        out_shape=(
            jax.ShapeDtypeStruct((B * S, L), jnp.float32),
            jax.ShapeDtypeStruct((1, 1), jnp.float32),
            jax.ShapeDtypeStruct((B, 1), jnp.float32),
        ),
        grid=(1,),
        in_specs=[
            pl.BlockSpec((B * S, H), lambda i: (0, 0)),
            pl.BlockSpec((H, L), lambda i: (0, 0)),
            pl.BlockSpec((1, L), lambda i: (0, 0)),
            pl.BlockSpec((B * S, 1), lambda i: (0, 0)),
            pl.BlockSpec((B * S, 1), lambda i: (0, 0)),
        ],
        out_specs=(
            pl.BlockSpec((B * S, L), lambda i: (0, 0)),
            pl.BlockSpec((1, 1), lambda i: (0, 0)),
            pl.BlockSpec((B, 1), lambda i: (0, 0)),
        ),
    )(x, wc.astype(jnp.bfloat16), bc.reshape(1, L), lab, msk)
    return logits2d.reshape(B, S, L), loss.reshape(1), seq.reshape(B)


# ----------------------------------------------------------------------------
# Parameter init (deterministic, synthetic) and plain-JAX glue
# ----------------------------------------------------------------------------
CFG = dict(
    vocab=64, hidden=32, heads=2, layers=2, intermediate=64,
    max_pos=32, type_vocab=2, num_labels=4,
)


def init_params(key, cfg):
    def nrm(k, shape):
        return 0.02 * jax.random.normal(k, shape, dtype=jnp.float32)

    keys = iter(jax.random.split(key, 64))
    H, I = cfg["hidden"], cfg["intermediate"]
    p = {
        "word_emb": nrm(next(keys), (cfg["vocab"], H)),
        "pos_emb": nrm(next(keys), (cfg["max_pos"], H)),
        "type_emb": nrm(next(keys), (cfg["type_vocab"], H)),
        "emb_ln_g": jnp.ones((H,), jnp.float32),
        "emb_ln_b": jnp.zeros((H,), jnp.float32),
        "wc": nrm(next(keys), (H, cfg["num_labels"])),
        "bc": jnp.zeros((cfg["num_labels"],), jnp.float32),
        "layers": [],
    }
    for _ in range(cfg["layers"]):
        p["layers"].append(
            dict(
                wq=nrm(next(keys), (H, H)), bq=jnp.zeros((H,), jnp.float32),
                wk=nrm(next(keys), (H, H)), bk=jnp.zeros((H,), jnp.float32),
                wv=nrm(next(keys), (H, H)), bv=jnp.zeros((H,), jnp.float32),
                wo=nrm(next(keys), (H, H)), bo=jnp.zeros((H,), jnp.float32),
                ln1_g=jnp.ones((H,), jnp.float32), ln1_b=jnp.zeros((H,), jnp.float32),
                wi=nrm(next(keys), (H, I)), bi=jnp.zeros((I,), jnp.float32),
                wo2=nrm(next(keys), (I, H)), bo2=jnp.zeros((H,), jnp.float32),
                ln2_g=jnp.ones((H,), jnp.float32), ln2_b=jnp.zeros((H,), jnp.float32),
            )
        )
    return p


def model_for_distant_supervision_forward(
    params, input_ids, attention_mask, token_type_ids, labels,
    *, multi_instance_bool=True, multi_instance_bool_neg=False, cfg=CFG,
):
    B, S = input_ids.shape
    # pad_seq_id: all rows in this example have >=1 attended token (see TODO above).

    # Embedding gathers stay in XLA (table lookup); LayerNorm happens in-kernel.
    pos_ids = jnp.arange(S, dtype=jnp.int32)[None, :]
    emb = (
        params["word_emb"][input_ids]
        + params["pos_emb"][pos_ids]
        + params["type_emb"][token_type_ids]
    )                                                                # [B, S, H]

    # Additive key-padding bias, computed once (0 keep, -1e9 pad).
    mask_bias = ((attention_mask.astype(jnp.float32) - 1.0) * 1e9)[:, None, :]

    sequence_output = bert_encoder(params, emb, mask_bias, cfg)      # [B, S, H]
    # dropout -> identity (eval mode)

    logits, loss, sequence_logits = classifier_and_loss(
        sequence_output, params["wc"], params["bc"], labels, attention_mask,
        mi_pos=multi_instance_bool, mi_neg=multi_instance_bool_neg,
    )

    # crf_bool=False branch of BertModelForQuestionAnswering:
    crf_sequence = jnp.full((B, S), -1, dtype=jnp.int32)
    active_sequence_logits = sequence_logits
    return loss, active_sequence_logits, logits, crf_sequence


# ----------------------------------------------------------------------------
# Main
# ----------------------------------------------------------------------------
if __name__ == "__main__":
    key = jax.random.PRNGKey(0)
    kp, ki, kl = jax.random.split(key, 3)

    B, S = 4, 16
    params = init_params(kp, CFG)

    input_ids = jax.random.randint(ki, (B, S), 0, CFG["vocab"], dtype=jnp.int32)
    token_type_ids = jnp.zeros((B, S), jnp.int32)
    # every row keeps at least a few tokens -> pad_seq_id == B
    attention_mask = (jnp.arange(S)[None, :] < (S - 2 * jnp.arange(B))[:, None]).astype(
        jnp.int32
    )
    labels = jax.random.randint(kl, (B, S), 0, CFG["num_labels"], dtype=jnp.int32)
    # force both positive (labels > 1 present) and negative (all labels <= 1) bags
    labels = labels.at[B // 2:].set(jnp.minimum(labels[B // 2:], 1))
    labels = labels.at[0, 0].set(2)

    fwd = jax.jit(
        functools.partial(
            model_for_distant_supervision_forward,
            multi_instance_bool=True, multi_instance_bool_neg=False,
        )
    )
    outputs = fwd(params, input_ids, attention_mask, token_type_ids, labels)
    outputs = jax.block_until_ready(outputs)
    loss, active_sequence_logits, logits, crf_sequence = outputs
    assert loss.shape == (1,) and jnp.isfinite(loss).all()
    assert active_sequence_logits.shape == (B,)
    assert logits.shape == (B, S, CFG["num_labels"])
    assert crf_sequence.shape == (B, S)
    print("KERNEL_OK")
</pallas_src>

<mosaic_0001>
module attributes {stable_mosaic.version = 11 : i64} {
  func.func @_encoder_layer_kernel(%arg0: i32, %arg1: i32, %arg2: memref<1x16x32xf32, #tpu.memory_space<vmem>>, %arg3: memref<1x1x16xf32, #tpu.memory_space<vmem>>, %arg4: memref<1x32xf32, #tpu.memory_space<vmem>>, %arg5: memref<1x32xf32, #tpu.memory_space<vmem>>, %arg6: memref<1x32x96xbf16, #tpu.memory_space<vmem>>, %arg7: memref<1x1x96xf32, #tpu.memory_space<vmem>>, %arg8: memref<1x32x32xbf16, #tpu.memory_space<vmem>>, %arg9: memref<1x1x32xf32, #tpu.memory_space<vmem>>, %arg10: memref<1x1x32xf32, #tpu.memory_space<vmem>>, %arg11: memref<1x1x32xf32, #tpu.memory_space<vmem>>, %arg12: memref<1x32x64xbf16, #tpu.memory_space<vmem>>, %arg13: memref<1x1x64xf32, #tpu.memory_space<vmem>>, %arg14: memref<1x64x32xbf16, #tpu.memory_space<vmem>>, %arg15: memref<1x1x32xf32, #tpu.memory_space<vmem>>, %arg16: memref<1x1x32xf32, #tpu.memory_space<vmem>>, %arg17: memref<1x1x32xf32, #tpu.memory_space<vmem>>, %arg18: memref<1x16x32xf32, #tpu.memory_space<vmem>>, %arg19: memref<16x32xf32, #tpu.memory_space<vmem>>) attributes {dimension_semantics = [#tpu.dimension_semantics<parallel>, #tpu.dimension_semantics<arbitrary>], iteration_bounds = array<i64: 4, 2>, scalar_prefetch = 0 : i64, scratch_operands = 1 : i64, tpu.core_type = #tpu.core_type<tc>, window_params = [{transform_indices = @transform_0, window_bounds = array<i64: 1, 16, 32>}, {transform_indices = @transform_1, window_bounds = array<i64: 1, 1, 16>}, {pipeline_mode = #tpu.pipeline_mode<synchronous>, transform_indices = @transform_2, window_bounds = array<i64: 1, 32>}, {pipeline_mode = #tpu.pipeline_mode<synchronous>, transform_indices = @transform_3, window_bounds = array<i64: 1, 32>}, {transform_indices = @transform_4, window_bounds = array<i64: 1, 32, 96>}, {transform_indices = @transform_5, window_bounds = array<i64: 1, 1, 96>}, {transform_indices = @transform_6, window_bounds = array<i64: 1, 32, 32>}, {transform_indices = @transform_7, window_bounds = array<i64: 1, 1, 32>}, {transform_indices = @transform_8, window_bounds = array<i64: 1, 1, 32>}, {transform_indices = @transform_9, window_bounds = array<i64: 1, 1, 32>}, {transform_indices = @transform_10, window_bounds = array<i64: 1, 32, 64>}, {transform_indices = @transform_11, window_bounds = array<i64: 1, 1, 64>}, {transform_indices = @transform_12, window_bounds = array<i64: 1, 64, 32>}, {transform_indices = @transform_13, window_bounds = array<i64: 1, 1, 32>}, {transform_indices = @transform_14, window_bounds = array<i64: 1, 1, 32>}, {transform_indices = @transform_15, window_bounds = array<i64: 1, 1, 32>}, {transform_indices = @transform_16, window_bounds = array<i64: 1, 16, 32>}]} {
    %c0_i32 = arith.constant 0 : i32
    %0 = arith.cmpi eq, %arg1, %c0_i32 : i32
    %1 = arith.extui %0 : i1 to i32
    %c0_i32_0 = arith.constant 0 : i32
    %2 = arith.cmpi ne, %1, %c0_i32_0 : i32
    scf.if %2 {
      %c0_71 = arith.constant 0 : index
      %c0_72 = arith.constant 0 : index
      %c0_73 = arith.constant 0 : index
      %156 = vector.load %arg2[%c0_71, %c0_72, %c0_73] : memref<1x16x32xf32, #tpu.memory_space<vmem>>, vector<1x16x32xf32>
      %157 = vector.shape_cast %156 : vector<1x16x32xf32> to vector<16x32xf32>
      %c0_74 = arith.constant 0 : index
      %c0_75 = arith.constant 0 : index
      %158 = vector.load %arg4[%c0_74, %c0_75] : memref<1x32xf32, #tpu.memory_space<vmem>>, vector<1x32xf32>
      %c0_76 = arith.constant 0 : index
      %c0_77 = arith.constant 0 : index
      %159 = vector.load %arg5[%c0_76, %c0_77] : memref<1x32xf32, #tpu.memory_space<vmem>>, vector<1x32xf32>
      %cst_78 = arith.constant dense<0.000000e+00> : vector<16xf32>
      %160 = vector.multi_reduction <add>, %157, %cst_78 [1] : vector<16x32xf32> to vector<16xf32>
      %161 = vector.shape_cast %160 : vector<16xf32> to vector<16x1xf32>
      %cst_79 = arith.constant 3.200000e+01 : f32
      %162 = vector.broadcast %cst_79 : f32 to vector<16x1xf32>
      %163 = arith.divf %161, %162 : vector<16x1xf32>
      %164 = vector.broadcast %163 : vector<16x1xf32> to vector<16x32xf32>
      %165 = arith.subf %157, %164 : vector<16x32xf32>
      %166 = arith.mulf %165, %165 : vector<16x32xf32>
      %cst_80 = arith.constant dense<0.000000e+00> : vector<16xf32>
      %167 = vector.multi_reduction <add>, %166, %cst_80 [1] : vector<16x32xf32> to vector<16xf32>
      %168 = vector.shape_cast %167 : vector<16xf32> to vector<16x1xf32>
      %cst_81 = arith.constant 3.200000e+01 : f32
      %169 = vector.broadcast %cst_81 : f32 to vector<16x1xf32>
      %170 = arith.divf %168, %169 : vector<16x1xf32>
      %171 = vector.broadcast %163 : vector<16x1xf32> to vector<16x32xf32>
      %172 = arith.subf %157, %171 : vector<16x32xf32>
      %cst_82 = arith.constant 9.99999996E-13 : f32
      %173 = vector.broadcast %cst_82 : f32 to vector<16x1xf32>
      %174 = arith.addf %170, %173 : vector<16x1xf32>
      %175 = math.rsqrt %174 : vector<16x1xf32>
      %176 = vector.broadcast %175 : vector<16x1xf32> to vector<16x32xf32>
      %177 = arith.mulf %172, %176 : vector<16x32xf32>
      %178 = vector.broadcast %158 : vector<1x32xf32> to vector<16x32xf32>
      %179 = arith.mulf %177, %178 : vector<16x32xf32>
      %180 = vector.broadcast %159 : vector<1x32xf32> to vector<16x32xf32>
      %181 = arith.addf %179, %180 : vector<16x32xf32>
      %c0_83 = arith.constant 0 : index
      %c0_84 = arith.constant 0 : index
      %182 = vector.load %arg19[%c0_83, %c0_84] : memref<16x32xf32, #tpu.memory_space<vmem>>, vector<16x32xf32>
      tpu.vector_store %arg19[%c0_83, %c0_84], %181 {strides = array<i32>} : memref<16x32xf32, #tpu.memory_space<vmem>>, vector<16x32xf32>,
    } else {
    }
    %c0 = arith.constant 0 : index
    %c0_1 = arith.constant 0 : index
    %3 = vector.load %arg19[%c0, %c0_1] : memref<16x32xf32, #tpu.memory_space<vmem>>, vector<16x32xf32>
    %4 = arith.truncf %3 : vector<16x32xf32> to vector<16x32xbf16>
    %c0_2 = arith.constant 0 : index
    %c0_3 = arith.constant 0 : index
    %c0_4 = arith.constant 0 : index
    %5 = vector.load %arg6[%c0_2, %c0_3, %c0_4] : memref<1x32x96xbf16, #tpu.memory_space<vmem>>, vector<1x32x96xbf16>
    %6 = vector.shape_cast %5 : vector<1x32x96xbf16> to vector<32x96xbf16>
    %cst = arith.constant dense<0.000000e+00> : vector<16x96xf32>
    %7 = tpu.matmul %4, %6, %cst {dimension_numbers = #tpu.dot_dimension_numbers<[1], [0], [0], [1], [0, 0, 1, 1], [], []>} : vector<16x32xbf16>, vector<32x96xbf16>, vector<16x96xf32> -> vector<16x96xf32>
    %c0_5 = arith.constant 0 : index
    %c0_6 = arith.constant 0 : index
    %c0_7 = arith.constant 0 : index
    %8 = vector.load %arg7[%c0_5, %c0_6, %c0_7] : memref<1x1x96xf32, #tpu.memory_space<vmem>>, vector<1x1x96xf32>
    %9 = vector.shape_cast %8 : vector<1x1x96xf32> to vector<1x96xf32>
    %10 = vector.broadcast %9 : vector<1x96xf32> to vector<16x96xf32>
    %11 = arith.addf %7, %10 : vector<16x96xf32>
    %c0_8 = arith.constant 0 : index
    %c0_9 = arith.constant 0 : index
    %c0_10 = arith.constant 0 : index
    %12 = vector.load %arg3[%c0_8, %c0_9, %c0_10] : memref<1x1x16xf32, #tpu.memory_space<vmem>>, vector<1x1x16xf32>
    %13 = vector.shape_cast %12 : vector<1x1x16xf32> to vector<1x16xf32>
    %14 = vector.extract_strided_slice %11 {offsets = [0, 0], sizes = [16, 16], strides = [1, 1]} : vector<16x96xf32> to vector<16x16xf32>
    %15 = vector.extract_strided_slice %11 {offsets = [0, 32], sizes = [16, 16], strides = [1, 1]} : vector<16x96xf32> to vector<16x16xf32>
    %16 = vector.extract_strided_slice %11 {offsets = [0, 64], sizes = [16, 16], strides = [1, 1]} : vector<16x96xf32> to vector<16x16xf32>
    %17 = arith.truncf %14 : vector<16x16xf32> to vector<16x16xbf16>
    %18 = arith.truncf %15 : vector<16x16xf32> to vector<16x16xbf16>
    %cst_11 = arith.constant dense<0.000000e+00> : vector<16x16xf32>
    %19 = tpu.matmul %17, %18, %cst_11 {dimension_numbers = #tpu.dot_dimension_numbers<[1], [1], [0], [0], [0, 0, 1, 0], [], []>} : vector<16x16xbf16>, vector<16x16xbf16>, vector<16x16xf32> -> vector<16x16xf32>
    %cst_12 = arith.constant 2.500000e-01 : f32
    %20 = vector.broadcast %cst_12 : f32 to vector<16x16xf32>
    %21 = arith.mulf %19, %20 : vector<16x16xf32>
    %22 = vector.broadcast %13 : vector<1x16xf32> to vector<16x16xf32>
    %23 = arith.addf %21, %22 : vector<16x16xf32>
    %cst_13 = arith.constant dense<0xFF800000> : vector<16xf32>
    %24 = vector.multi_reduction <maximumf>, %23, %cst_13 [1] : vector<16x16xf32> to vector<16xf32>
    %25 = vector.shape_cast %24 : vector<16xf32> to vector<16x1xf32>
    %26 = vector.broadcast %25 : vector<16x1xf32> to vector<16x16xf32>
    %27 = arith.subf %23, %26 : vector<16x16xf32>
    %28 = math.exp %27 : vector<16x16xf32>
    %cst_14 = arith.constant dense<0.000000e+00> : vector<16xf32>
    %29 = vector.multi_reduction <add>, %28, %cst_14 [1] : vector<16x16xf32> to vector<16xf32>
    %30 = vector.shape_cast %29 : vector<16xf32> to vector<16x1xf32>
    %31 = tpu.reciprocal %30 {approx = true} : vector<16x1xf32> -> vector<16x1xf32>
    %32 = vector.broadcast %31 : vector<16x1xf32> to vector<16x16xf32>
    %33 = arith.mulf %28, %32 : vector<16x16xf32>
    %34 = arith.truncf %33 : vector<16x16xf32> to vector<16x16xbf16>
    %35 = arith.truncf %16 : vector<16x16xf32> to vector<16x16xbf16>
    %cst_15 = arith.constant dense<0.000000e+00> : vector<16x16xf32>
    %36 = tpu.matmul %34, %35, %cst_15 {dimension_numbers = #tpu.dot_dimension_numbers<[1], [0], [0], [1], [0, 0, 1, 1], [], []>} : vector<16x16xbf16>, vector<16x16xbf16>, vector<16x16xf32> -> vector<16x16xf32>
    %37 = vector.extract_strided_slice %11 {offsets = [0, 16], sizes = [16, 16], strides = [1, 1]} : vector<16x96xf32> to vector<16x16xf32>
    %38 = vector.extract_strided_slice %11 {offsets = [0, 48], sizes = [16, 16], strides = [1, 1]} : vector<16x96xf32> to vector<16x16xf32>
    %39 = vector.extract_strided_slice %11 {offsets = [0, 80], sizes = [16, 16], strides = [1, 1]} : vector<16x96xf32> to vector<16x16xf32>
    %40 = arith.truncf %37 : vector<16x16xf32> to vector<16x16xbf16>
    %41 = arith.truncf %38 : vector<16x16xf32> to vector<16x16xbf16>
    %cst_16 = arith.constant dense<0.000000e+00> : vector<16x16xf32>
    %42 = tpu.matmul %40, %41, %cst_16 {dimension_numbers = #tpu.dot_dimension_numbers<[1], [1], [0], [0], [0, 0, 1, 0], [], []>} : vector<16x16xbf16>, vector<16x16xbf16>, vector<16x16xf32> -> vector<16x16xf32>
    %cst_17 = arith.constant 2.500000e-01 : f32
    %43 = vector.broadcast %cst_17 : f32 to vector<16x16xf32>
    %44 = arith.mulf %42, %43 : vector<16x16xf32>
    %45 = vector.broadcast %13 : vector<1x16xf32> to vector<16x16xf32>
    %46 = arith.addf %44, %45 : vector<16x16xf32>
    %cst_18 = arith.constant dense<0xFF800000> : vector<16xf32>
    %47 = vector.multi_reduction <maximumf>, %46, %cst_18 [1] : vector<16x16xf32> to vector<16xf32>
    %48 = vector.shape_cast %47 : vector<16xf32> to vector<16x1xf32>
    %49 = vector.broadcast %48 : vector<16x1xf32> to vector<16x16xf32>
    %50 = arith.subf %46, %49 : vector<16x16xf32>
    %51 = math.exp %50 : vector<16x16xf32>
    %cst_19 = arith.constant dense<0.000000e+00> : vector<16xf32>
    %52 = vector.multi_reduction <add>, %51, %cst_19 [1] : vector<16x16xf32> to vector<16xf32>
    %53 = vector.shape_cast %52 : vector<16xf32> to vector<16x1xf32>
    %54 = tpu.reciprocal %53 {approx = true} : vector<16x1xf32> -> vector<16x1xf32>
    %55 = vector.broadcast %54 : vector<16x1xf32> to vector<16x16xf32>
    %56 = arith.mulf %51, %55 : vector<16x16xf32>
    %57 = arith.truncf %56 : vector<16x16xf32> to vector<16x16xbf16>
    %58 = arith.truncf %39 : vector<16x16xf32> to vector<16x16xbf16>
    %cst_20 = arith.constant dense<0.000000e+00> : vector<16x16xf32>
    %59 = tpu.matmul %57, %58, %cst_20 {dimension_numbers = #tpu.dot_dimension_numbers<[1], [0], [0], [1], [0, 0, 1, 1], [], []>} : vector<16x16xbf16>, vector<16x16xbf16>, vector<16x16xf32> -> vector<16x16xf32>
    %60 = tpu.concatenate %36, %59 in 1 : vector<16x16xf32>, vector<16x16xf32> -> vector<16x32xf32>
    %61 = arith.truncf %60 : vector<16x32xf32> to vector<16x32xbf16>
    %c0_21 = arith.constant 0 : index
    %c0_22 = arith.constant 0 : index
    %c0_23 = arith.constant 0 : index
    %62 = vector.load %arg8[%c0_21, %c0_22, %c0_23] : memref<1x32x32xbf16, #tpu.memory_space<vmem>>, vector<1x32x32xbf16>
    %63 = vector.shape_cast %62 : vector<1x32x32xbf16> to vector<32x32xbf16>
    %cst_24 = arith.constant dense<0.000000e+00> : vector<16x32xf32>
    %64 = tpu.matmul %61, %63, %cst_24 {dimension_numbers = #tpu.dot_dimension_numbers<[1], [0], [0], [1], [0, 0, 1, 1], [], []>} : vector<16x32xbf16>, vector<32x32xbf16>, vector<16x32xf32> -> vector<16x32xf32>
    %c0_25 = arith.constant 0 : index
    %c0_26 = arith.constant 0 : index
    %c0_27 = arith.constant 0 : index
    %65 = vector.load %arg9[%c0_25, %c0_26, %c0_27] : memref<1x1x32xf32, #tpu.memory_space<vmem>>, vector<1x1x32xf32>
    %66 = vector.shape_cast %65 : vector<1x1x32xf32> to vector<1x32xf32>
    %67 = vector.broadcast %66 : vector<1x32xf32> to vector<16x32xf32>
    %68 = arith.addf %64, %67 : vector<16x32xf32>
    %69 = arith.addf %3, %68 : vector<16x32xf32>
    %c0_28 = arith.constant 0 : index
    %c0_29 = arith.constant 0 : index
    %c0_30 = arith.constant 0 : index
    %70 = vector.load %arg10[%c0_28, %c0_29, %c0_30] : memref<1x1x32xf32, #tpu.memory_space<vmem>>, vector<1x1x32xf32>
    %71 = vector.shape_cast %70 : vector<1x1x32xf32> to vector<1x32xf32>
    %c0_31 = arith.constant 0 : index
    %c0_32 = arith.constant 0 : index
    %c0_33 = arith.constant 0 : index
    %72 = vector.load %arg11[%c0_31, %c0_32, %c0_33] : memref<1x1x32xf32, #tpu.memory_space<vmem>>, vector<1x1x32xf32>
    %73 = vector.shape_cast %72 : vector<1x1x32xf32> to vector<1x32xf32>
    %cst_34 = arith.constant dense<0.000000e+00> : vector<16xf32>
    %74 = vector.multi_reduction <add>, %69, %cst_34 [1] : vector<16x32xf32> to vector<16xf32>
    %75 = vector.shape_cast %74 : vector<16xf32> to vector<16x1xf32>
    %cst_35 = arith.constant 3.200000e+01 : f32
    %76 = vector.broadcast %cst_35 : f32 to vector<16x1xf32>
    %77 = arith.divf %75, %76 : vector<16x1xf32>
    %78 = vector.broadcast %77 : vector<16x1xf32> to vector<16x32xf32>
    %79 = arith.subf %69, %78 : vector<16x32xf32>
    %80 = arith.mulf %79, %79 : vector<16x32xf32>
    %cst_36 = arith.constant dense<0.000000e+00> : vector<16xf32>
    %81 = vector.multi_reduction <add>, %80, %cst_36 [1] : vector<16x32xf32> to vector<16xf32>
    %82 = vector.shape_cast %81 : vector<16xf32> to vector<16x1xf32>
    %cst_37 = arith.constant 3.200000e+01 : f32
    %83 = vector.broadcast %cst_37 : f32 to vector<16x1xf32>
    %84 = arith.divf %82, %83 : vector<16x1xf32>
    %85 = vector.broadcast %77 : vector<16x1xf32> to vector<16x32xf32>
    %86 = arith.subf %69, %85 : vector<16x32xf32>
    %cst_38 = arith.constant 9.99999996E-13 : f32
    %87 = vector.broadcast %cst_38 : f32 to vector<16x1xf32>
    %88 = arith.addf %84, %87 : vector<16x1xf32>
    %89 = math.rsqrt %88 : vector<16x1xf32>
    %90 = vector.broadcast %89 : vector<16x1xf32> to vector<16x32xf32>
    %91 = arith.mulf %86, %90 : vector<16x32xf32>
    %92 = vector.broadcast %71 : vector<1x32xf32> to vector<16x32xf32>
    %93 = arith.mulf %91, %92 : vector<16x32xf32>
    %94 = vector.broadcast %73 : vector<1x32xf32> to vector<16x32xf32>
    %95 = arith.addf %93, %94 : vector<16x32xf32>
    %96 = arith.truncf %95 : vector<16x32xf32> to vector<16x32xbf16>
    %c0_39 = arith.constant 0 : index
    %c0_40 = arith.constant 0 : index
    %c0_41 = arith.constant 0 : index
    %97 = vector.load %arg12[%c0_39, %c0_40, %c0_41] : memref<1x32x64xbf16, #tpu.memory_space<vmem>>, vector<1x32x64xbf16>
    %98 = vector.shape_cast %97 : vector<1x32x64xbf16> to vector<32x64xbf16>
    %cst_42 = arith.constant dense<0.000000e+00> : vector<16x64xf32>
    %99 = tpu.matmul %96, %98, %cst_42 {dimension_numbers = #tpu.dot_dimension_numbers<[1], [0], [0], [1], [0, 0, 1, 1], [], []>} : vector<16x32xbf16>, vector<32x64xbf16>, vector<16x64xf32> -> vector<16x64xf32>
    %c0_43 = arith.constant 0 : index
    %c0_44 = arith.constant 0 : index
    %c0_45 = arith.constant 0 : index
    %100 = vector.load %arg13[%c0_43, %c0_44, %c0_45] : memref<1x1x64xf32, #tpu.memory_space<vmem>>, vector<1x1x64xf32>
    %101 = vector.shape_cast %100 : vector<1x1x64xf32> to vector<1x64xf32>
    %102 = vector.broadcast %101 : vector<1x64xf32> to vector<16x64xf32>
    %103 = arith.addf %99, %102 : vector<16x64xf32>
    %104 = arith.mulf %103, %103 : vector<16x64xf32>
    %105 = arith.mulf %103, %104 : vector<16x64xf32>
    %cst_46 = arith.constant 4.471500e-02 : f32
    %106 = vector.broadcast %cst_46 : f32 to vector<16x64xf32>
    %107 = arith.mulf %106, %105 : vector<16x64xf32>
    %108 = arith.addf %103, %107 : vector<16x64xf32>
    %cst_47 = arith.constant 0.797884583 : f32
    %109 = vector.broadcast %cst_47 : f32 to vector<16x64xf32>
    %110 = arith.mulf %109, %108 : vector<16x64xf32>
    %111 = math.tanh %110 : vector<16x64xf32>
    %cst_48 = arith.constant 1.000000e+00 : f32
    %112 = vector.broadcast %cst_48 : f32 to vector<16x64xf32>
    %113 = arith.addf %112, %111 : vector<16x64xf32>
    %cst_49 = arith.constant 5.000000e-01 : f32
    %114 = vector.broadcast %cst_49 : f32 to vector<16x64xf32>
    %115 = arith.mulf %114, %113 : vector<16x64xf32>
    %116 = arith.mulf %103, %115 : vector<16x64xf32>
    %117 = arith.truncf %116 : vector<16x64xf32> to vector<16x64xbf16>
    %c0_50 = arith.constant 0 : index
    %c0_51 = arith.constant 0 : index
    %c0_52 = arith.constant 0 : index
    %118 = vector.load %arg14[%c0_50, %c0_51, %c0_52] : memref<1x64x32xbf16, #tpu.memory_space<vmem>>, vector<1x64x32xbf16>
    %119 = vector.shape_cast %118 : vector<1x64x32xbf16> to vector<64x32xbf16>
    %cst_53 = arith.constant dense<0.000000e+00> : vector<16x32xf32>
    %120 = tpu.matmul %117, %119, %cst_53 {dimension_numbers = #tpu.dot_dimension_numbers<[1], [0], [0], [1], [0, 0, 1, 1], [], []>} : vector<16x64xbf16>, vector<64x32xbf16>, vector<16x32xf32> -> vector<16x32xf32>
    %c0_54 = arith.constant 0 : index
    %c0_55 = arith.constant 0 : index
    %c0_56 = arith.constant 0 : index
    %121 = vector.load %arg15[%c0_54, %c0_55, %c0_56] : memref<1x1x32xf32, #tpu.memory_space<vmem>>, vector<1x1x32xf32>
    %122 = vector.shape_cast %121 : vector<1x1x32xf32> to vector<1x32xf32>
    %123 = vector.broadcast %122 : vector<1x32xf32> to vector<16x32xf32>
    %124 = arith.addf %120, %123 : vector<16x32xf32>
    %125 = arith.addf %95, %124 : vector<16x32xf32>
    %c0_57 = arith.constant 0 : index
    %c0_58 = arith.constant 0 : index
    %c0_59 = arith.constant 0 : index
    %126 = vector.load %arg16[%c0_57, %c0_58, %c0_59] : memref<1x1x32xf32, #tpu.memory_space<vmem>>, vector<1x1x32xf32>
    %127 = vector.shape_cast %126 : vector<1x1x32xf32> to vector<1x32xf32>
    %c0_60 = arith.constant 0 : index
    %c0_61 = arith.constant 0 : index
    %c0_62 = arith.constant 0 : index
    %128 = vector.load %arg17[%c0_60, %c0_61, %c0_62] : memref<1x1x32xf32, #tpu.memory_space<vmem>>, vector<1x1x32xf32>
    %129 = vector.shape_cast %128 : vector<1x1x32xf32> to vector<1x32xf32>
    %cst_63 = arith.constant dense<0.000000e+00> : vector<16xf32>
    %130 = vector.multi_reduction <add>, %125, %cst_63 [1] : vector<16x32xf32> to vector<16xf32>
    %131 = vector.shape_cast %130 : vector<16xf32> to vector<16x1xf32>
    %cst_64 = arith.constant 3.200000e+01 : f32
    %132 = vector.broadcast %cst_64 : f32 to vector<16x1xf32>
    %133 = arith.divf %131, %132 : vector<16x1xf32>
    %134 = vector.broadcast %133 : vector<16x1xf32> to vector<16x32xf32>
    %135 = arith.subf %125, %134 : vector<16x32xf32>
    %136 = arith.mulf %135, %135 : vector<16x32xf32>
    %cst_65 = arith.constant dense<0.000000e+00> : vector<16xf32>
    %137 = vector.multi_reduction <add>, %136, %cst_65 [1] : vector<16x32xf32> to vector<16xf32>
    %138 = vector.shape_cast %137 : vector<16xf32> to vector<16x1xf32>
    %cst_66 = arith.constant 3.200000e+01 : f32
    %139 = vector.broadcast %cst_66 : f32 to vector<16x1xf32>
    %140 = arith.divf %138, %139 : vector<16x1xf32>
    %141 = vector.broadcast %133 : vector<16x1xf32> to vector<16x32xf32>
    %142 = arith.subf %125, %141 : vector<16x32xf32>
    %cst_67 = arith.constant 9.99999996E-13 : f32
    %143 = vector.broadcast %cst_67 : f32 to vector<16x1xf32>
    %144 = arith.addf %140, %143 : vector<16x1xf32>
    %145 = math.rsqrt %144 : vector<16x1xf32>
    %146 = vector.broadcast %145 : vector<16x1xf32> to vector<16x32xf32>
    %147 = arith.mulf %142, %146 : vector<16x32xf32>
    %148 = vector.broadcast %127 : vector<1x32xf32> to vector<16x32xf32>
    %149 = arith.mulf %147, %148 : vector<16x32xf32>
    %150 = vector.broadcast %129 : vector<1x32xf32> to vector<16x32xf32>
    %151 = arith.addf %149, %150 : vector<16x32xf32>
    %c0_68 = arith.constant 0 : index
    %c0_69 = arith.constant 0 : index
    %152 = vector.load %arg19[%c0_68, %c0_69] : memref<16x32xf32, #tpu.memory_space<vmem>>, vector<16x32xf32>
    tpu.vector_store %arg19[%c0_68, %c0_69], %151 {strides = array<i32>} : memref<16x32xf32, #tpu.memory_space<vmem>>, vector<16x32xf32>,
    %c1_i32 = arith.constant 1 : i32
    %153 = arith.cmpi eq, %arg1, %c1_i32 : i32
    %154 = arith.extui %153 : i1 to i32
    %c0_i32_70 = arith.constant 0 : i32
    %155 = arith.cmpi ne, %154, %c0_i32_70 : i32
    scf.if %155 {
      %c0_71 = arith.constant 0 : index
      %c0_72 = arith.constant 0 : index
      %c0_73 = arith.constant 0 : index
      %156 = vector.load %arg18[%c0_71, %c0_72, %c0_73] : memref<1x16x32xf32, #tpu.memory_space<vmem>>, vector<1x16x32xf32>
      %157 = vector.shape_cast %156 : vector<1x16x32xf32> to vector<16x32xf32>
      %158 = vector.shape_cast %151 : vector<16x32xf32> to vector<1x16x32xf32>
      tpu.vector_store %arg18[%c0_71, %c0_72, %c0_73], %158 {strides = array<i32>} : memref<1x16x32xf32, #tpu.memory_space<vmem>>, vector<1x16x32xf32>,
    } else {
    }
    return
  }
  func.func @transform_0(%arg0: i32, %arg1: i32) -> (i32, i32, i32) {
    %c0_i32 = arith.constant 0 : i32
    %c0_i32_0 = arith.constant 0 : i32
    %c0_i32_1 = arith.constant 0 : i32
    return %arg0, %c0_i32, %c0_i32_0 : i32, i32, i32
  }
  func.func @transform_1(%arg0: i32, %arg1: i32) -> (i32, i32, i32) {
    %c0_i32 = arith.constant 0 : i32
    %c0_i32_0 = arith.constant 0 : i32
    %c0_i32_1 = arith.constant 0 : i32
    return %arg0, %c0_i32, %c0_i32_0 : i32, i32, i32
  }
  func.func @transform_2(%arg0: i32, %arg1: i32) -> (i32, i32) {
    %c0_i32 = arith.constant 0 : i32
    %c0_i32_0 = arith.constant 0 : i32
    %c0_i32_1 = arith.constant 0 : i32
    return %c0_i32, %c0_i32_0 : i32, i32
  }
  func.func @transform_3(%arg0: i32, %arg1: i32) -> (i32, i32) {
    %c0_i32 = arith.constant 0 : i32
    %c0_i32_0 = arith.constant 0 : i32
    %c0_i32_1 = arith.constant 0 : i32
    return %c0_i32, %c0_i32_0 : i32, i32
  }
  func.func @transform_4(%arg0: i32, %arg1: i32) -> (i32, i32, i32) {
    %c0_i32 = arith.constant 0 : i32
    %c0_i32_0 = arith.constant 0 : i32
    %c0_i32_1 = arith.constant 0 : i32
    return %arg1, %c0_i32, %c0_i32_0 : i32, i32, i32
  }
  func.func @transform_5(%arg0: i32, %arg1: i32) -> (i32, i32, i32) {
    %c0_i32 = arith.constant 0 : i32
    %c0_i32_0 = arith.constant 0 : i32
    %c0_i32_1 = arith.constant 0 : i32
    return %arg1, %c0_i32, %c0_i32_0 : i32, i32, i32
  }
  func.func @transform_6(%arg0: i32, %arg1: i32) -> (i32, i32, i32) {
    %c0_i32 = arith.constant 0 : i32
    %c0_i32_0 = arith.constant 0 : i32
    %c0_i32_1 = arith.constant 0 : i32
    return %arg1, %c0_i32, %c0_i32_0 : i32, i32, i32
  }
  func.func @transform_7(%arg0: i32, %arg1: i32) -> (i32, i32, i32) {
    %c0_i32 = arith.constant 0 : i32
    %c0_i32_0 = arith.constant 0 : i32
    %c0_i32_1 = arith.constant 0 : i32
    return %arg1, %c0_i32, %c0_i32_0 : i32, i32, i32
  }
  func.func @transform_8(%arg0: i32, %arg1: i32) -> (i32, i32, i32) {
    %c0_i32 = arith.constant 0 : i32
    %c0_i32_0 = arith.constant 0 : i32
    %c0_i32_1 = arith.constant 0 : i32
    return %arg1, %c0_i32, %c0_i32_0 : i32, i32, i32
  }
  func.func @transform_9(%arg0: i32, %arg1: i32) -> (i32, i32, i32) {
    %c0_i32 = arith.constant 0 : i32
    %c0_i32_0 = arith.constant 0 : i32
    %c0_i32_1 = arith.constant 0 : i32
    return %arg1, %c0_i32, %c0_i32_0 : i32, i32, i32
  }
  func.func @transform_10(%arg0: i32, %arg1: i32) -> (i32, i32, i32) {
    %c0_i32 = arith.constant 0 : i32
    %c0_i32_0 = arith.constant 0 : i32
    %c0_i32_1 = arith.constant 0 : i32
    return %arg1, %c0_i32, %c0_i32_0 : i32, i32, i32
  }
  func.func @transform_11(%arg0: i32, %arg1: i32) -> (i32, i32, i32) {
    %c0_i32 = arith.constant 0 : i32
    %c0_i32_0 = arith.constant 0 : i32
    %c0_i32_1 = arith.constant 0 : i32
    return %arg1, %c0_i32, %c0_i32_0 : i32, i32, i32
  }
  func.func @transform_12(%arg0: i32, %arg1: i32) -> (i32, i32, i32) {
    %c0_i32 = arith.constant 0 : i32
    %c0_i32_0 = arith.constant 0 : i32
    %c0_i32_1 = arith.constant 0 : i32
    return %arg1, %c0_i32, %c0_i32_0 : i32, i32, i32
  }
  func.func @transform_13(%arg0: i32, %arg1: i32) -> (i32, i32, i32) {
    %c0_i32 = arith.constant 0 : i32
    %c0_i32_0 = arith.constant 0 : i32
    %c0_i32_1 = arith.constant 0 : i32
    return %arg1, %c0_i32, %c0_i32_0 : i32, i32, i32
  }
  func.func @transform_14(%arg0: i32, %arg1: i32) -> (i32, i32, i32) {
    %c0_i32 = arith.constant 0 : i32
    %c0_i32_0 = arith.constant 0 : i32
    %c0_i32_1 = arith.constant 0 : i32
    return %arg1, %c0_i32, %c0_i32_0 : i32, i32, i32
  }
  func.func @transform_15(%arg0: i32, %arg1: i32) -> (i32, i32, i32) {
    %c0_i32 = arith.constant 0 : i32
    %c0_i32_0 = arith.constant 0 : i32
    %c0_i32_1 = arith.constant 0 : i32
    return %arg1, %c0_i32, %c0_i32_0 : i32, i32, i32
  }
  func.func @transform_16(%arg0: i32, %arg1: i32) -> (i32, i32, i32) {
    %c0_i32 = arith.constant 0 : i32
    %c0_i32_0 = arith.constant 0 : i32
    %c0_i32_1 = arith.constant 0 : i32
    return %arg0, %c0_i32, %c0_i32_0 : i32, i32, i32
  }
}

module attributes {stable_mosaic.version = 11 : i64} {
  func.func @_cls_loss_kernel(%arg0: i32, %arg1: memref<64x32xf32, #tpu.memory_space<vmem>>, %arg2: memref<32x4xbf16, #tpu.memory_space<vmem>>, %arg3: memref<1x4xf32, #tpu.memory_space<vmem>>, %arg4: memref<64x1xi32, #tpu.memory_space<vmem>>, %arg5: memref<64x1xi32, #tpu.memory_space<vmem>>, %arg6: memref<64x4xf32, #tpu.memory_space<vmem>>, %arg7: memref<1x1xf32, #tpu.memory_space<vmem>>, %arg8: memref<4x1xf32, #tpu.memory_space<vmem>>) attributes {dimension_semantics = [#tpu.dimension_semantics<arbitrary>], iteration_bounds = array<i64: 1>, scalar_prefetch = 0 : i64, scratch_operands = 0 : i64, tpu.core_type = #tpu.core_type<tc>, window_params = [{pipeline_mode = #tpu.pipeline_mode<synchronous>, transform_indices = @transform_0, window_bounds = array<i64: 64, 32>}, {pipeline_mode = #tpu.pipeline_mode<synchronous>, transform_indices = @transform_1, window_bounds = array<i64: 32, 4>}, {pipeline_mode = #tpu.pipeline_mode<synchronous>, transform_indices = @transform_2, window_bounds = array<i64: 1, 4>}, {pipeline_mode = #tpu.pipeline_mode<synchronous>, transform_indices = @transform_3, window_bounds = array<i64: 64, 1>}, {pipeline_mode = #tpu.pipeline_mode<synchronous>, transform_indices = @transform_4, window_bounds = array<i64: 64, 1>}, {pipeline_mode = #tpu.pipeline_mode<synchronous>, transform_indices = @transform_5, window_bounds = array<i64: 64, 4>}, {pipeline_mode = #tpu.pipeline_mode<synchronous>, transform_indices = @transform_6, window_bounds = array<i64: 1, 1>}, {pipeline_mode = #tpu.pipeline_mode<synchronous>, transform_indices = @transform_7, window_bounds = array<i64: 4, 1>}]} {
    %c0 = arith.constant 0 : index
    %c0_0 = arith.constant 0 : index
    %0 = vector.load %arg1[%c0, %c0_0] : memref<64x32xf32, #tpu.memory_space<vmem>>, vector<64x32xf32>
    %1 = arith.truncf %0 : vector<64x32xf32> to vector<64x32xbf16>
    %c0_1 = arith.constant 0 : index
    %c0_2 = arith.constant 0 : index
    %2 = vector.load %arg2[%c0_1, %c0_2] : memref<32x4xbf16, #tpu.memory_space<vmem>>, vector<32x4xbf16>
    %cst = arith.constant dense<0.000000e+00> : vector<64x4xf32>
    %3 = tpu.matmul %1, %2, %cst {dimension_numbers = #tpu.dot_dimension_numbers<[1], [0], [0], [1], [0, 0, 1, 1], [], []>} : vector<64x32xbf16>, vector<32x4xbf16>, vector<64x4xf32> -> vector<64x4xf32>
    %c0_3 = arith.constant 0 : index
    %c0_4 = arith.constant 0 : index
    %4 = vector.load %arg3[%c0_3, %c0_4] : memref<1x4xf32, #tpu.memory_space<vmem>>, vector<1x4xf32>
    %5 = vector.broadcast %4 : vector<1x4xf32> to vector<64x4xf32>
    %6 = arith.addf %3, %5 : vector<64x4xf32>
    %c0_5 = arith.constant 0 : index
    %c0_6 = arith.constant 0 : index
    %7 = vector.load %arg6[%c0_5, %c0_6] : memref<64x4xf32, #tpu.memory_space<vmem>>, vector<64x4xf32>
    tpu.vector_store %arg6[%c0_5, %c0_6], %6 {strides = array<i32>} : memref<64x4xf32, #tpu.memory_space<vmem>>, vector<64x4xf32>,
    %c0_7 = arith.constant 0 : index
    %c0_8 = arith.constant 0 : index
    %8 = vector.load %arg4[%c0_7, %c0_8] : memref<64x1xi32, #tpu.memory_space<vmem>>, vector<64x1xi32>
    %c0_9 = arith.constant 0 : index
    %c0_10 = arith.constant 0 : index
    %9 = vector.load %arg5[%c0_9, %c0_10] : memref<64x1xi32, #tpu.memory_space<vmem>>, vector<64x1xi32>
    %10 = tpu.iota {dimensions = array<i32: 1>} : vector<64x4xi32>
    %11 = vector.broadcast %8 : vector<64x1xi32> to vector<64x4xi32>
    %12 = arith.cmpi eq, %10, %11 : vector<64x4xi32>
    %13 = arith.extui %12 : vector<64x4xi1> to vector<64x4xi32>
    %14 = arith.sitofp %13 : vector<64x4xi32> to vector<64x4xf32>
    %15 = arith.mulf %6, %14 : vector<64x4xf32>
    %cst_11 = arith.constant dense<0.000000e+00> : vector<64xf32>
    %16 = vector.multi_reduction <add>, %15, %cst_11 [1] : vector<64x4xf32> to vector<64xf32>
    %17 = vector.shape_cast %16 : vector<64xf32> to vector<64x1xf32>
    %cst_12 = arith.constant dense<0xFF800000> : vector<64xf32>
    %18 = vector.multi_reduction <maximumf>, %6, %cst_12 [1] : vector<64x4xf32> to vector<64xf32>
    %19 = vector.shape_cast %18 : vector<64xf32> to vector<64x1xf32>
    %20 = vector.broadcast %19 : vector<64x1xf32> to vector<64x4xf32>
    %21 = arith.subf %6, %20 : vector<64x4xf32>
    %22 = math.exp %21 : vector<64x4xf32>
    %cst_13 = arith.constant dense<0.000000e+00> : vector<64xf32>
    %23 = vector.multi_reduction <add>, %22, %cst_13 [1] : vector<64x4xf32> to vector<64xf32>
    %24 = vector.shape_cast %23 : vector<64xf32> to vector<64x1xf32>
    %25 = math.log %24 : vector<64x1xf32>
    %26 = arith.addf %19, %25 : vector<64x1xf32>
    %c1_i32 = arith.constant 1 : i32
    %27 = vector.broadcast %c1_i32 : i32 to vector<64x1xi32>
    %28 = arith.cmpi eq, %9, %27 : vector<64x1xi32>
    %29 = arith.subf %17, %26 : vector<64x1xf32>
    %cst_14 = arith.constant 0.000000e+00 : f32
    %30 = vector.broadcast %cst_14 : f32 to vector<64x1xf32>
    %31 = arith.select %28, %29, %30 : vector<64x1xi1>, vector<64x1xf32>
    %32 = tpu.iota {dimensions = array<i32: 0>} : vector<4x64xi32>
    %33 = tpu.iota {dimensions = array<i32: 1>} : vector<4x64xi32>
    %c16_i32 = arith.constant 16 : i32
    %34 = vector.broadcast %c16_i32 : i32 to vector<4x64xi32>
    %35 = arith.muli %32, %34 : vector<4x64xi32>
    %36 = arith.cmpi sge, %33, %35 : vector<4x64xi32>
    %c1_i32_15 = arith.constant 1 : i32
    %37 = vector.broadcast %c1_i32_15 : i32 to vector<4x64xi32>
    %38 = arith.addi %32, %37 : vector<4x64xi32>
    %c16_i32_16 = arith.constant 16 : i32
    %39 = vector.broadcast %c16_i32_16 : i32 to vector<4x64xi32>
    %40 = arith.muli %38, %39 : vector<4x64xi32>
    %41 = arith.cmpi slt, %33, %40 : vector<4x64xi32>
    %42 = arith.andi %36, %41 : vector<4x64xi1>
    %43 = arith.extui %42 : vector<4x64xi1> to vector<4x64xi32>
    %44 = arith.sitofp %43 : vector<4x64xi32> to vector<4x64xf32>
    %c1_i32_17 = arith.constant 1 : i32
    %45 = vector.broadcast %c1_i32_17 : i32 to vector<64x1xi32>
    %46 = arith.cmpi sgt, %8, %45 : vector<64x1xi32>
    %47 = arith.extui %46 : vector<64x1xi1> to vector<64x1xi32>
    %48 = arith.sitofp %47 : vector<64x1xi32> to vector<64x1xf32>
    %49 = tpu.concatenate %31, %48 in 1 : vector<64x1xf32>, vector<64x1xf32> -> vector<64x2xf32>
    %cst_18 = arith.constant dense<0.000000e+00> : vector<4x2xf32>
    %50 = tpu.matmul %44, %49, %cst_18 {dimension_numbers = #tpu.dot_dimension_numbers<[1], [0], [0], [1], [0, 0, 1, 1], [], []>} : vector<4x64xf32>, vector<64x2xf32>, vector<4x2xf32> -> vector<4x2xf32>
    %51 = vector.extract_strided_slice %50 {offsets = [0, 0], sizes = [4, 1], strides = [1, 1]} : vector<4x2xf32> to vector<4x1xf32>
    %c0_19 = arith.constant 0 : index
    %c0_20 = arith.constant 0 : index
    %52 = vector.load %arg8[%c0_19, %c0_20] : memref<4x1xf32, #tpu.memory_space<vmem>>, vector<4x1xf32>
    tpu.vector_store %arg8[%c0_19, %c0_20], %51 {strides = array<i32>} : memref<4x1xf32, #tpu.memory_space<vmem>>, vector<4x1xf32>,
    %53 = vector.extract_strided_slice %50 {offsets = [0, 1], sizes = [4, 1], strides = [1, 1]} : vector<4x2xf32> to vector<4x1xf32>
    %cst_21 = arith.constant 0.000000e+00 : f32
    %54 = vector.broadcast %cst_21 : f32 to vector<4x1xf32>
    %55 = arith.cmpf ogt, %53, %54 : vector<4x1xf32>
    %cst_22 = arith.constant dense<true> : vector<4x1xi1>
    %56 = arith.xori %55, %cst_22 : vector<4x1xi1>
    %57 = arith.extui %55 : vector<4x1xi1> to vector<4x1xi32>
    %58 = arith.sitofp %57 : vector<4x1xi32> to vector<4x1xf32>
    %59 = vector.shape_cast %58 : vector<4x1xf32> to vector<1x4x1xf32>
    %cst_23 = arith.constant dense<0.000000e+00> : vector<1xf32>
    %60 = vector.multi_reduction <add>, %59, %cst_23 [1, 2] : vector<1x4x1xf32> to vector<1xf32>
    %61 = vector.shape_cast %60 : vector<1xf32> to vector<1x1x1xf32>
    %62 = vector.extract %61[0, 0, 0] : f32 from vector<1x1x1xf32>
    %cst_24 = arith.constant 0.000000e+00 : f32
    %63 = arith.cmpf ogt, %62, %cst_24 : f32
    %64 = arith.extui %56 : vector<4x1xi1> to vector<4x1xi32>
    %65 = arith.sitofp %64 : vector<4x1xi32> to vector<4x1xf32>
    %66 = vector.shape_cast %65 : vector<4x1xf32> to vector<1x4x1xf32>
    %cst_25 = arith.constant dense<0.000000e+00> : vector<1xf32>
    %67 = vector.multi_reduction <add>, %66, %cst_25 [1, 2] : vector<1x4x1xf32> to vector<1xf32>
    %68 = vector.shape_cast %67 : vector<1xf32> to vector<1x1x1xf32>
    %69 = vector.extract %68[0, 0, 0] : f32 from vector<1x1x1xf32>
    %cst_26 = arith.constant 0.000000e+00 : f32
    %70 = arith.cmpf ogt, %69, %cst_26 : f32
    %cst_27 = arith.constant -1.000000e+30 : f32
    %71 = vector.broadcast %cst_27 : f32 to vector<4x1xf32>
    %72 = arith.select %55, %51, %71 : vector<4x1xi1>, vector<4x1xf32>
    %73 = vector.shape_cast %72 : vector<4x1xf32> to vector<1x4x1xf32>
    %cst_28 = arith.constant dense<0xFF800000> : vector<1xf32>
    %74 = vector.multi_reduction <maximumf>, %73, %cst_28 [1, 2] : vector<1x4x1xf32> to vector<1xf32>
    %75 = vector.shape_cast %74 : vector<1xf32> to vector<1x1x1xf32>
    %76 = vector.extract %75[0, 0, 0] : f32 from vector<1x1x1xf32>
    %77 = vector.broadcast %76 : f32 to vector<4x1xf32>
    %78 = arith.subf %72, %77 : vector<4x1xf32>
    %79 = math.exp %78 : vector<4x1xf32>
    %cst_29 = arith.constant 0.000000e+00 : f32
    %80 = vector.broadcast %cst_29 : f32 to vector<4x1xf32>
    %81 = arith.select %55, %79, %80 : vector<4x1xi1>, vector<4x1xf32>
    %82 = vector.shape_cast %81 : vector<4x1xf32> to vector<1x4x1xf32>
    %cst_30 = arith.constant dense<0.000000e+00> : vector<1xf32>
    %83 = vector.multi_reduction <add>, %82, %cst_30 [1, 2] : vector<1x4x1xf32> to vector<1xf32>
    %84 = vector.shape_cast %83 : vector<1xf32> to vector<1x1x1xf32>
    %85 = vector.extract %84[0, 0, 0] : f32 from vector<1x1x1xf32>
    %cst_31 = arith.constant 1.000000e-30 : f32
    %86 = arith.maximumf %85, %cst_31 : f32
    %87 = math.log %86 : f32
    %88 = arith.addf %76, %87 : f32
    %cst_32 = arith.constant 0.000000e+00 : f32
    %89 = arith.subf %cst_32, %88 : f32
    %cst_33 = arith.constant 0.000000e+00 : f32
    %90 = vector.broadcast %cst_33 : f32 to vector<4x1xf32>
    %91 = arith.subf %90, %51 : vector<4x1xf32>
    %cst_34 = arith.constant -1.000000e+30 : f32
    %92 = vector.broadcast %cst_34 : f32 to vector<4x1xf32>
    %93 = arith.select %56, %91, %92 : vector<4x1xi1>, vector<4x1xf32>
    %94 = vector.shape_cast %93 : vector<4x1xf32> to vector<1x4x1xf32>
    %cst_35 = arith.constant dense<0xFF800000> : vector<1xf32>
    %95 = vector.multi_reduction <maximumf>, %94, %cst_35 [1, 2] : vector<1x4x1xf32> to vector<1xf32>
    %96 = vector.shape_cast %95 : vector<1xf32> to vector<1x1x1xf32>
    %97 = vector.extract %96[0, 0, 0] : f32 from vector<1x1x1xf32>
    %98 = vector.broadcast %97 : f32 to vector<4x1xf32>
    %99 = arith.subf %93, %98 : vector<4x1xf32>
    %100 = math.exp %99 : vector<4x1xf32>
    %cst_36 = arith.constant 0.000000e+00 : f32
    %101 = vector.broadcast %cst_36 : f32 to vector<4x1xf32>
    %102 = arith.select %56, %100, %101 : vector<4x1xi1>, vector<4x1xf32>
    %103 = vector.shape_cast %102 : vector<4x1xf32> to vector<1x4x1xf32>
    %cst_37 = arith.constant dense<0.000000e+00> : vector<1xf32>
    %104 = vector.multi_reduction <add>, %103, %cst_37 [1, 2] : vector<1x4x1xf32> to vector<1xf32>
    %105 = vector.shape_cast %104 : vector<1xf32> to vector<1x1x1xf32>
    %106 = vector.extract %105[0, 0, 0] : f32 from vector<1x1x1xf32>
    %cst_38 = arith.constant 1.000000e-30 : f32
    %107 = arith.maximumf %106, %cst_38 : f32
    %108 = math.log %107 : f32
    %109 = arith.addf %97, %108 : f32
    %cst_39 = arith.constant 0.000000e+00 : f32
    %110 = arith.select %63, %89, %cst_39 : f32
    %cst_40 = arith.constant 0.000000e+00 : f32
    %111 = arith.select %70, %109, %cst_40 : f32
    %112 = arith.addf %110, %111 : f32
    %113 = vector.broadcast %112 : f32 to vector<1x1xf32>
    %c0_41 = arith.constant 0 : index
    %c0_42 = arith.constant 0 : index
    %114 = vector.load %arg7[%c0_41, %c0_42] : memref<1x1xf32, #tpu.memory_space<vmem>>, vector<1x1xf32>
    tpu.vector_store %arg7[%c0_41, %c0_42], %113 {strides = array<i32>} : memref<1x1xf32, #tpu.memory_space<vmem>>, vector<1x1xf32>,
    return
  }
  func.func @transform_0(%arg0: i32) -> (i32, i32) {
    %c0_i32 = arith.constant 0 : i32
    %c0_i32_0 = arith.constant 0 : i32
    %c0_i32_1 = arith.constant 0 : i32
    return %c0_i32, %c0_i32_0 : i32, i32
  }
  func.func @transform_1(%arg0: i32) -> (i32, i32) {
    %c0_i32 = arith.constant 0 : i32
    %c0_i32_0 = arith.constant 0 : i32
    %c0_i32_1 = arith.constant 0 : i32
    return %c0_i32, %c0_i32_0 : i32, i32
  }
  func.func @transform_2(%arg0: i32) -> (i32, i32) {
    %c0_i32 = arith.constant 0 : i32
    %c0_i32_0 = arith.constant 0 : i32
    %c0_i32_1 = arith.constant 0 : i32
    return %c0_i32, %c0_i32_0 : i32, i32
  }
  func.func @transform_3(%arg0: i32) -> (i32, i32) {
    %c0_i32 = arith.constant 0 : i32
    %c0_i32_0 = arith.constant 0 : i32
    %c0_i32_1 = arith.constant 0 : i32
    return %c0_i32, %c0_i32_0 : i32, i32
  }
  func.func @transform_4(%arg0: i32) -> (i32, i32) {
    %c0_i32 = arith.constant 0 : i32
    %c0_i32_0 = arith.constant 0 : i32
    %c0_i32_1 = arith.constant 0 : i32
    return %c0_i32, %c0_i32_0 : i32, i32
  }
  func.func @transform_5(%arg0: i32) -> (i32, i32) {
    %c0_i32 = arith.constant 0 : i32
    %c0_i32_0 = arith.constant 0 : i32
    %c0_i32_1 = arith.constant 0 : i32
    return %c0_i32, %c0_i32_0 : i32, i32
  }
  func.func @transform_6(%arg0: i32) -> (i32, i32) {
    %c0_i32 = arith.constant 0 : i32
    %c0_i32_0 = arith.constant 0 : i32
    %c0_i32_1 = arith.constant 0 : i32
    return %c0_i32, %c0_i32_0 : i32, i32
  }
  func.func @transform_7(%arg0: i32) -> (i32, i32) {
    %c0_i32 = arith.constant 0 : i32
    %c0_i32_0 = arith.constant 0 : i32
    %c0_i32_1 = arith.constant 0 : i32
    return %c0_i32, %c0_i32_0 : i32, i32
  }
}

</mosaic_0001>

<bundles_post_ra>
// kernel: model_for_distant_supervision_forward.3
= control target key start
LH: loop header
LB: loop body
LE: loop exit
PB: predicated region body
PF: predicated region fallthrough
CT: control target
= control target key end

     0   :  { %vm60_vm0 = vcmask 261120   ;;  %s1290_s0 = inlined_call_operand.vmem [shape: f32[64,32], index: 0, kind: input, shape index: {}]   ;;  %s1291_s1 = inlined_call_operand.vmem [shape: bf16[32,4], index: 1, kind: input, shape index: {}]   ;;  %s1292_s2 = inlined_call_operand.vmem [shape: f32[1,4], index: 2, kind: input, shape index: {}]   ;;  %s1293_s3 = inlined_call_operand.vmem [shape: s32[64,1], index: 3, kind: input, shape index: {}]   ;;  %s1294_s4 = inlined_call_operand.vmem [shape: s32[64,1], index: 4, kind: input, shape index: {}]   ;;  %s1295_s5 = inlined_call_operand.vmem [shape: f32[64,4], index: 5, kind: output, shape index: {0}]   ;;  %s1296_s6 = inlined_call_operand.hbm [shape: f32[1,1], index: 6, kind: output, shape index: {1}]   ;;  %s1297_s7 = inlined_call_operand.vmem [shape: f32[4,1], index: 7, kind: output, shape index: {2}]  }
   0x1   :  { %v800_v0 = vld [vmem:[%s1291_s1] sm:$0xff]   ;;  %v801_v1 = vld [vmem:[%s1291_s1 + $0x8] sm:$0xff]   ;;  %v27_v5 = vld [vmem:[%s1290_s0 + $0x10] sm:$0xff] }
   0x2   :  { %705 = vmatprep.subr.bf16.mxu0 %v800_v0  ;;  %v25_v2 = vld [vmem:[%s1290_s0] sm:$0xff]  ;;  %v26_v3 = vld [vmem:[%s1290_s0 + $0x8] sm:$0xff]  ;;  %v28_v6 = vld [vmem:[%s1290_s0 + $0x18] sm:$0xff] }
   0x3   :  { %706 = vmatpush3.bf16.msra.mxu0 %v800_v0  ;;  %v33_v4 = vpack.c.bf16 %v26_v3, %v25_v2  ;;  %v29_v7 = vld [vmem:[%s1290_s0 + $0x20] sm:$0xff]  ;;  %v30_v8 = vld [vmem:[%s1290_s0 + $0x28] sm:$0xff] }
   0x4   :  { %707 = vmatprep.subr.bf16.mxu0 %v801_v1 }
   0x5   :  { %13 = vsyncpa [#allocation3], 0  ;;  %709 = vmatprep.mubr.msk.bf16.mxu0 %vm60_vm0, %v33_v4  ;;  %v34_v9 = vpack.c.bf16 %v28_v6, %v27_v5  ;;  %v35_v10 = vpack.c.bf16 %v30_v8, %v29_v7  ;;  %v31_v11 = vld [vmem:[%s1290_s0 + $0x30] sm:$0xff]  ;;  %v32_v12 = vld [vmem:[%s1290_s0 + $0x38] sm:$0xff]  ;;  %v866_v14 = vmov 0   ;;  %vm138_vm1 = vcmask 31744  }
   0x6   :  { %v36_v13 = vpack.c.bf16 %v32_v12, %v31_v11  ;;  %774 = vset.pattern.permute.xlu1 %v866_v14  ;;  %773 = vset.pattern.permute.xlu0 %v866_v14  ;;  %v663_v15 = vld [vmem:[%s1292_s2] ss:$0 sm:$0xff]  ;;  %v1023_v38 = vld [vmem:[%s1293_s3 + $0x8] sm:$0xff]  ;;  %v1029_v39 = vld [vmem:[%s1293_s3 + $0x10] sm:$0xff]  ;;  %v163_v50 = vlaneseq  ;;  %v867_v55 = vmov 0.0   ;;  %s874_s28 = smov [#allocation2]  }
   0x7   :  { %708 = vmatpush3.bf16.msra.mxu0 %v801_v1  ;;  %v1035_v40 = vld [vmem:[%s1293_s3 + $0x18] sm:$0xff]  ;;  %v1041_v41 = vld [vmem:[%s1293_s3 + $0x20] sm:$0xff]  ;;  %v1052_v43 = vld [vmem:[%s1293_s3 + $0x28] sm:$0xff]  ;;  %vm376_vm8 = vcmp.gt.s32.totalorder %v1023_v38, 1  ;;  %vm377_vm14 = vcmp.gt.s32.totalorder %v1029_v39, 1  ;;  %s649_s29 = sshll.u32 %s874_s28, 4  ;;  %s650_s29 = int_to_ptr.vmem [resolvable:$true] %s649_s29 }
   0x8   :  { %v1046_v42 = vld [vmem:[%s1293_s3] sm:$0xff]  ;;  %v1059_v44 = vld [vmem:[%s1293_s3 + $0x30] sm:$0xff]  ;;  %v1069_v47 = vld [vmem:[%s1293_s3 + $0x38] sm:$0xff]  ;;  %v1081_v53 = vand.u32 127, %v163_v50  ;;  %s868_s3 = smov 1   ;;  %vm378_vm15 = vcmp.gt.s32.totalorder %v1035_v40, 1  ;;  %p847_p3 = scmp.lt.s32.totalorder %s650_s29, %s650_s29 }
   0x9   :  { %vm375_vm9 = vcmp.gt.s32.totalorder %v1046_v42, 1  ;;  %vm381_vm10 = vcmp.gt.s32.totalorder %v1059_v44, 1  ;;  %vm382_vm11 = vcmp.gt.s32.totalorder %v1069_v47, 1  ;;  %s873_s21 = smov 1e-30   ;;  %s842_s8 = scalar_lea.vmem %s650_s29, 16 }
   0xa   :  { %710 = vmatmul.mubr.msk.bf16.vlgmr.msra.gmra.mrb[0].mxu0 %vm60_vm0, %v34_v9  ;;  %p843_p2 = scmp.ne.s32.totalorder %s650_s29, %s842_s8  ;;  %s846_s9 = scalar_lea.vmem %s650_s29, 32 }
   0xb   :  { %713 = vmatprep.mubr.msk.bf16.mxu0 %vm60_vm0, %v35_v10  ;;  %p848_p4 = scmp.lt.s32.totalorder %s846_s9, %s842_s8 }
   0xd   :  { %p849_p5 = por %p848_p4, %p847_p3 }
   0xf   :  { %p850_p6 = pnand %p849_p5, %p843_p2 }
  0x12   :  { %714 = vmatmul.mubr.msk.bf16.gmra.mrb[4].mxu0 %vm60_vm0, %v36_v13  ;;  %vm379_vm0 = vcmp.gt.s32.totalorder %v1041_v41, 1 }
  0xdd   :  { %v711_v16 = vpop.f32.mrb[0].mxu0 }
  0xde   :  { %v952_v17 = vadd.f32 %v711_v16, %v663_v15  ;;  %v107_v18 = vpop.f32.mrb[1].mxu0 }
  0xdf   :  { %v954_v19 = vadd.f32 %v663_v15, %v107_v18  ;;  %v712_v20 = vpop.f32.mrb[2].mxu0 }
  0xe0   :  { %141 = vst.msk [vmem:[%s1295_s5 + $0x10] sm:$0xff] %vm138_vm1, %v952_v17  ;;  %v961_v21 = vadd.f32 %v712_v20, %v663_v15  ;;  %v110_v22 = vpop.f32.mrb[3].mxu0  ;;  %v251_v23 = vsel %vm138_vm1, %v952_v17, -inf }
  0xe1   :  { %139 = vst.msk [vmem:[%s1295_s5] sm:$0xff] %vm138_vm1, %v954_v19  ;;  %v970_v24 = vadd.f32 %v663_v15, %v110_v22  ;;  %252 = vmax.xlane.f32.xlu1 %v251_v23  ;;  %v245_v25 = vsel %vm138_vm1, %v954_v19, -inf }
  0xe2   :  { %142 = vst.msk [vmem:[%s1295_s5 + $0x18] sm:$0xff] %vm138_vm1, %v961_v21  ;;  %246 = vmax.xlane.f32.xlu0 %v245_v25  ;;  %v254_v26 = vsel %vm138_vm1, %v961_v21, -inf }
  0xe3   :  { %140 = vst.msk [vmem:[%s1295_s5 + $0x8] sm:$0xff] %vm138_vm1, %v970_v24  ;;  %v248_v28 = vsel %vm138_vm1, %v970_v24, -inf }
  0xe5   :  { %255 = vmax.xlane.f32.xlu1 %v254_v26  ;;  %v715_v27 = vpop.f32.mrb[4].mxu0 }
  0xe6   :  { %v988_v29 = vadd.f32 %v715_v27, %v663_v15  ;;  %249 = vmax.xlane.f32.xlu0 %v248_v28  ;;  %v123_v30 = vpop.f32.mrb[5].mxu0 }
  0xe7   :  { %v990_v31 = vadd.f32 %v663_v15, %v123_v30  ;;  %v716_v32 = vpop.f32.mrb[6].mxu0 }
  0xe8   :  { %145 = vst.msk [vmem:[%s1295_s5 + $0x30] sm:$0xff] %vm138_vm1, %v988_v29  ;;  %v263_v33 = vsel %vm138_vm1, %v988_v29, -inf  ;;  %v999_v34 = vadd.f32 %v716_v32, %v663_v15  ;;  %v126_v35 = vpop.f32.mrb[7].mxu0 }
  0xe9   :  { %143 = vst.msk [vmem:[%s1295_s5 + $0x20] sm:$0xff] %vm138_vm1, %v990_v31  ;;  %v1006_v36 = vadd.f32 %v663_v15, %v126_v35  ;;  %v257_v37 = vsel %vm138_vm1, %v990_v31, -inf }
  0xea   :  { %264 = vmax.xlane.f32.xlu0 %v263_v33  ;;  %146 = vst.msk [vmem:[%s1295_s5 + $0x38] sm:$0xff] %vm138_vm1, %v999_v34  ;;  %v266_v45 = vsel %vm138_vm1, %v999_v34, -inf }
  0xeb   :  { %144 = vst.msk [vmem:[%s1295_s5 + $0x28] sm:$0xff] %vm138_vm1, %v1006_v36  ;;  %v260_v46 = vsel %vm138_vm1, %v1006_v36, -inf  ;;  %s872_s5 = smov 127  }
  0xee   :  { %258 = vmax.xlane.f32.xlu0 %v257_v37 }
  0xf6   :  { %169 = vperm.xlu1 %774, %v1023_v38  }
  0xfa   :  { %172 = vperm.xlu1 %774, %v1029_v39  }
  0xfe   :  { %175 = vperm.xlu1 %774, %v1035_v40  }
 0x102   :  { %178 = vperm.xlu1 %774, %v1041_v41  }
 0x104   :  { %166 = vperm.xlu0 %773, %v1046_v42  }
 0x106   :  { %181 = vperm.xlu1 %774, %v1052_v43  }
 0x10a   :  { %184 = vperm.xlu1 %774, %v1059_v44  }
 0x12e   :  { %267 = vmax.xlane.f32.xlu1 %v266_v45  ;;  %v680_v45 = vsel %vm376_vm8, 1.0, %v867_v55 }
 0x132   :  { %261 = vmax.xlane.f32.xlu1 %v260_v46  ;;  %v679_v46 = vsel %vm375_vm9, 1.0, %v867_v55 }
 0x143   :  { %187 = vperm.xlu1 %774, %v1069_v47  }
 0x16e   :  { %v1072_v48 = vpop.xlane.xlu1 %252 }
 0x16f   :  { %v1074_v49 = vpop.xlane.xlu0 %246  ;;  %v271_v2 = vsub.f32 %v952_v17, %v1072_v48 }
 0x171   :  { %v281_v9 = vmul.f32 1.442695, %v271_v2 }
 0x172   :  { %v1076_v51 = vpop.xlane.xlu1 %255 }
 0x173   :  { %v1078_v52 = vpop.xlane.xlu0 %249  ;;  %802 = vpow2.f32 %v281_v9  ;;  %v272_v44 = vsub.f32 %v961_v21, %v1076_v51  ;;  %v682_v9 = vsel %vm378_vm15, 1.0, %v867_v55  ;;  %vm440_vm15 = vcmask 523264  }
 0x174   :  { %v270_v10 = vsub.f32 %v970_v24, %v1078_v52 }
 0x175   :  { %v283_v47 = vmul.f32 1.442695, %v272_v44 }
 0x176   :  { %v170_v54 = vpop.permute.xlu1 %169  ;;  %v279_v14 = vmul.f32 1.442695, %v270_v10 }
 0x177   :  { %vm190_vm2 = vcmp.eq.s32.totalorder %v1081_v53, %v170_v54  ;;  %v1085_v57 = vpop.xlane.xlu0 %264  ;;  %v775_v54 = vpack.i.bf16 %v680_v45, %v679_v46 }
 0x178   :  { %v671_v56 = vsel %vm190_vm2, 1.0, %v867_v55  ;;  %v275_v15 = vsub.f32 %v988_v29, %v1085_v57  ;;  %804 = vpow2.f32 %v279_v14  ;;  %vm380_vm2 = vcmp.gt.s32.totalorder %v1052_v43, 1 }
 0x179   :  { %v214_v58 = vmul.f32 %v671_v56, %v970_v24  ;;  %v685_v56 = vsel %vm381_vm10, 1.0, %v867_v55 }
 0x17a   :  { %v173_v59 = vpop.permute.xlu1 %172  ;;  %v289_v22 = vmul.f32 1.442695, %v275_v15 }
 0x17b   :  { %v224_v60 = vsel %vm138_vm1, %v214_v58, 0.0  ;;  %v1089_v62 = vpop.xlane.xlu0 %258  ;;  %vm191_vm4 = vcmp.eq.s32.totalorder %v1081_v53, %v173_v59  ;;  %v686_v58 = vsel %vm382_vm11, 1.0, %v867_v55  ;;  %v269_v59 = vsub.f32 %v954_v19, %v1074_v49 }
 0x17c   :  { %225 = vadd.xlane.f32.xlu1 %v224_v60  ;;  %v672_v5 = vsel %vm191_vm4, 1.0, %v867_v55  ;;  %v273_v23 = vsub.f32 %v990_v31, %v1089_v62  ;;  %806 = vpow2.f32 %v289_v22  ;;  %v790_v38 = vpack.i.bf16 %v686_v58, %v685_v56 }
 0x17d   :  { %v215_v12 = vmul.f32 %v672_v5, %v952_v17  ;;  %v803_v28 = vpop.eup %802  ;;  %v277_v42 = vmul.f32 1.442695, %v269_v59 }
 0x17e   :  { %v176_v61 = vpop.permute.xlu1 %175  ;;  %v285_v26 = vmul.f32 1.442695, %v273_v23  ;;  %v299_v30 = vsel %vm138_vm1, %v803_v28, 0.0 }
 0x17f   :  { %vm192_vm3 = vcmp.eq.s32.totalorder %v1081_v53, %v176_v61  ;;  %v227_v18 = vsel %vm138_vm1, %v215_v12, 0.0 }
 0x180   :  { %v673_v63 = vsel %vm192_vm3, 1.0, %v867_v55  ;;  %808 = vpow2.f32 %v285_v26  ;;  %vm870_vm3 = vmmov 0  }
 0x181   :  { %v216_v0 = vmul.f32 %v673_v63, %v961_v21  ;;  %810 = vpow2.f32 %v277_v42  ;;  %733 = vmatprep.mubr.msk.f32.mxu1 %vm870_vm3, %v867_v55  ;;  %vm871_vm3 = vmmov 1  }
 0x182   :  { %v179_v1 = vpop.permute.xlu1 %178  ;;  %812 = vpow2.f32 %v283_v47 }
 0x183   :  { %v167_v3 = vpop.permute.xlu0 %166  ;;  %v230_v4 = vsel %vm138_vm1, %v216_v0, 0.0  ;;  %vm193_vm6 = vcmp.eq.s32.totalorder %v1081_v53, %v179_v1 }
 0x184   :  { %vm189_vm5 = vcmp.eq.s32.totalorder %v1081_v53, %v167_v3  ;;  %231 = vadd.xlane.f32.xlu1 %v230_v4  ;;  %v674_v20 = vsel %vm193_vm6, 1.0, %v867_v55 }
 0x185   :  { %v670_v6 = vsel %vm189_vm5, 1.0, %v867_v55  ;;  %v217_v25 = vmul.f32 %v674_v20, %v990_v31  ;;  %v684_v20 = vsel %vm380_vm2, 1.0, %v867_v55  ;;  %vm431_vm5 = vcmask 7168  }
 0x186   :  { %v1101_v7 = vpop.permute.xlu1 %181  ;;  %v213_v8 = vmul.f32 %v670_v6, %v954_v19 }
 0x187   :  { %v233_v27 = vsel %vm138_vm1, %v217_v25, 0.0  ;;  %vm194_vm12 = vcmp.eq.s32.totalorder %v1081_v53, %v1101_v7 }
 0x188   :  { %v221_v11 = vsel %vm138_vm1, %v213_v8, 0.0  ;;  %v675_v63 = vsel %vm194_vm12, 1.0, %v867_v55  ;;  %v681_v8 = vsel %vm377_vm14, 1.0, %v867_v55 }
 0x189   :  { %222 = vadd.xlane.f32.xlu0 %v221_v11  ;;  %v218_v2 = vmul.f32 %v675_v63, %v1006_v36  ;;  %v780_v10 = vpack.i.bf16 %v682_v9, %v681_v8  ;;  %v869_v11 = vmov 0.0|0.0  }
 0x18a   :  { %v185_v13 = vpop.permute.xlu1 %184  ;;  %736 = vmatprep.subr.bf16.mxu1 %v869_v11 }
 0x18b   :  { %vm195_vm7 = vcmp.eq.s32.totalorder %v1081_v53, %v185_v13  ;;  %v236_v3 = vsel %vm138_vm1, %v218_v2, 0.0 }
 0x18c   :  { %v676_v16 = vsel %vm195_vm7, 1.0, %v867_v55 }
 0x18d   :  { %228 = vadd.xlane.f32.xlu0 %v227_v18  ;;  %v219_v17 = vmul.f32 %v676_v16, %v988_v29  ;;  %v805_v29 = vpop.eup %804 }
 0x18e   :  { %v296_v32 = vsel %vm138_vm1, %v805_v29, 0.0  ;;  %v807_v33 = vpop.eup %806 }
 0x18f   :  { %v239_v24 = vsel %vm138_vm1, %v219_v17, 0.0  ;;  %v311_v35 = vsel %vm138_vm1, %v807_v33, 0.0  ;;  %v809_v37 = vpop.eup %808 }
 0x190   :  { %v305_v31 = vsel %vm138_vm1, %v809_v37, 0.0  ;;  %v811_v4 = vpop.eup %810 }
 0x191   :  { %240 = vadd.xlane.f32.xlu0 %v239_v24  ;;  %v293_v5 = vsel %vm138_vm1, %v811_v4, 0.0  ;;  %v813_v6 = vpop.eup %812  ;;  %v158_v4 = vld [vmem:[%s1294_s4 + $0x18] sm:$0xff] }
 0x192   :  { %v302_v7 = vsel %vm138_vm1, %v813_v6, 0.0  ;;  %vm344_vm7 = vcmp.eq.s32.totalorder %v158_v4, 1 }
 0x195   :  { %234 = vadd.xlane.f32.xlu0 %v233_v27 }
 0x199   :  { %300 = vadd.xlane.f32.xlu0 %v299_v30 }
 0x19d   :  { %297 = vadd.xlane.f32.xlu0 %v296_v32 }
 0x1a1   :  { %312 = vadd.xlane.f32.xlu0 %v311_v35 }
 0x1a5   :  { %306 = vadd.xlane.f32.xlu0 %v305_v31 }
 0x1bb   :  { %v1135_v60 = vpop.xlane.xlu1 %267  ;;  %776 = vrot.lane.b32.xlu0 %v775_v54, %s868_s3  ;;  %v156_v54 = vld [vmem:[%s1294_s4 + $0x8] sm:$0xff] }
 0x1bc   :  { %v276_v12 = vsub.f32 %v999_v34, %v1135_v60 }
 0x1be   :  { %v291_v13 = vmul.f32 1.442695, %v276_v12 }
 0x1bf   :  { %v1140_v61 = vpop.xlane.xlu1 %261  ;;  %791 = vrot.lane.b32.xlu0 %v790_v38, %s868_s3  ;;  %v155_v38 = vld [vmem:[%s1294_s4] sm:$0xff] }
 0x1c0   :  { %v274_v14 = vsub.f32 %v1006_v36, %v1140_v61  ;;  %814 = vpow2.f32 %v291_v13  ;;  %vm341_vm4 = vcmp.eq.s32.totalorder %v155_v38, 1 }
 0x1c2   :  { %v287_v39 = vmul.f32 1.442695, %v274_v14 }
 0x1c3   :  { %v188_v19 = vpop.permute.xlu1 %187 }
 0x1c4   :  { %vm196_vm13 = vcmp.eq.s32.totalorder %v1081_v53, %v188_v19  ;;  %816 = vpow2.f32 %v287_v39 }
 0x1c5   :  { %v677_v0 = vsel %vm196_vm13, 1.0, %v867_v55 }
 0x1c6   :  { %v220_v1 = vmul.f32 %v677_v0, %v999_v34  ;;  %v683_v34 = vsel %vm379_vm0, 1.0, %v867_v55  ;;  %v157_v0 = vld [vmem:[%s1294_s4 + $0x10] sm:$0xff]  ;;  %vm514_vm0 = vcmask 3072  }
 0x1c7   :  { %v785_v36 = vpack.i.bf16 %v684_v20, %v683_v34  ;;  %vm343_vm6 = vcmp.eq.s32.totalorder %v157_v0, 1 }
 0x1c8   :  { %v242_v21 = vsel %vm138_vm1, %v220_v1, 0.0 }
 0x1c9   :  { %243 = vadd.xlane.f32.xlu1 %v242_v21 }
 0x1ca   :  { %v815_v40 = vpop.eup %814 }
 0x1cb   :  { %v314_v15 = vsel %vm138_vm1, %v815_v40, 0.0 }
 0x1cd   :  { %237 = vadd.xlane.f32.xlu1 %v236_v3 }
 0x1ce   :  { %v817_v16 = vpop.eup %816 }
 0x1cf   :  { %v308_v18 = vsel %vm138_vm1, %v817_v16, 0.0  ;;  %vm342_vm1 = vcmp.eq.s32.totalorder %v156_v54, 1 }
 0x1d1   :  { %294 = vadd.xlane.f32.xlu1 %v293_v5 }
 0x1d5   :  { %303 = vadd.xlane.f32.xlu1 %v302_v7 }
 0x1e6   :  { %781 = vrot.lane.b32.xlu1 %v780_v10, %s868_s3 }
 0x209   :  { %v226_v41 = vpop.xlane.xlu1 %225 }
 0x20a   :  { %315 = vadd.xlane.f32.xlu1 %v314_v15 }
 0x20e   :  { %309 = vadd.xlane.f32.xlu1 %v308_v18 }
 0x211   :  { %v232_v26 = vpop.xlane.xlu1 %231 }
 0x216   :  { %v223_v17 = vpop.xlane.xlu0 %222 }
 0x21a   :  { %v229_v22 = vpop.xlane.xlu0 %228 }
 0x21e   :  { %v1172_v23 = vpop.xlane.xlu0 %240 }
 0x21f   :  { %786 = vrot.lane.b32.xlu1 %v785_v36, %s868_s3 }
 0x222   :  { %v1174_v24 = vpop.xlane.xlu0 %234 }
 0x226   :  { %v301_v25 = vpop.xlane.xlu0 %300 }
 0x22a   :  { %v298_v43 = vpop.xlane.xlu0 %297 }
 0x22b   :  { %818 = vlog2.f32 %v298_v43 }
 0x22c   :  { %820 = vlog2.f32 %v301_v25  ;;  %v366_v25 = vshrl.u32 %v163_v50, 7  ;;  %v162_v50 = vld [vmem:[%s1294_s4 + $0x38] sm:$0xff] }
 0x22d   :  { %vm348_vm10 = vcmp.eq.s32.totalorder %v162_v50, 1 }
 0x22e   :  { %v313_v32 = vpop.xlane.xlu0 %312 }
 0x232   :  { %v307_v45 = vpop.xlane.xlu0 %306 }
 0x235   :  { %v819_v29 = vpop.eup %818 }
 0x236   :  { %v320_v33 = vmul.f32 0.6931472, %v819_v29  ;;  %v821_v37 = vpop.eup %820  ;;  %v777_v58 = vpop.permute.xlu0 %776 }
 0x237   :  { %v322_v46 = vmul.f32 0.6931472, %v821_v37  ;;  %v779_v19 = vunpack.i.h.bf16 %v777_v58  ;;  %v778_v63 = vunpack.i.l.bf16 %v777_v58 }
 0x238   :  { %v334_v31 = vadd.f32 %v320_v33, %v1078_v52 }
 0x239   :  { %v335_v44 = vadd.f32 %v322_v46, %v1072_v48 }
 0x23a   :  { %v350_v42 = vsub.f32 %v226_v41, %v334_v31 }
 0x23b   :  { %v351_v48 = vsub.f32 %v229_v22, %v335_v44 }
 0x23c   :  { %v358_v3 = vsel %vm342_vm1, %v350_v42, 0.0 }
 0x23d   :  { %v433_v8 = vsel %vm431_vm5, %v358_v3, %v779_v19  ;;  %v359_v13 = vsel %vm343_vm6, %v351_v48, 0.0 }
 0x256   :  { %v1176_v27 = vpop.xlane.xlu1 %243 }
 0x25a   :  { %v1178_v28 = vpop.xlane.xlu1 %237 }
 0x25e   :  { %v295_v30 = vpop.xlane.xlu1 %294 }
 0x25f   :  { %822 = vlog2.f32 %v295_v30  ;;  %v159_v30 = vld [vmem:[%s1294_s4 + $0x20] sm:$0xff] }
 0x260   :  { %vm345_vm8 = vcmp.eq.s32.totalorder %v159_v30, 1 }
 0x262   :  { %v304_v35 = vpop.xlane.xlu1 %303 }
 0x263   :  { %824 = vlog2.f32 %v304_v35  ;;  %v160_v35 = vld [vmem:[%s1294_s4 + $0x28] sm:$0xff] }
 0x264   :  { %826 = vlog2.f32 %v307_v45  ;;  %vm346_vm9 = vcmp.eq.s32.totalorder %v160_v35, 1 }
 0x265   :  { %828 = vlog2.f32 %v313_v32 }
 0x266   :  { %v782_v21 = vpop.permute.xlu1 %781 }
 0x267   :  { %v783_v6 = vunpack.i.l.bf16 %v782_v21  ;;  %v784_v12 = vunpack.i.h.bf16 %v782_v21 }
 0x269   :  { %v823_v56 = vpop.eup %822  ;;  %v434_v39 = vsel %vm431_vm5, %v359_v13, %v783_v6 }
 0x26a   :  { %v318_v59 = vmul.f32 0.6931472, %v823_v56  ;;  %v792_v56 = vpop.permute.xlu0 %791 }
 0x26b   :  { %v794_v38 = vunpack.i.h.bf16 %v792_v56  ;;  %v793_v44 = vunpack.i.l.bf16 %v792_v56 }
 0x26c   :  { %v333_v47 = vadd.f32 %v318_v59, %v1074_v49  ;;  %v367_v59 = vmul.u32 16, %v366_v25 }
 0x26d   :  { %v825_v52 = vpop.eup %824 }
 0x26e   :  { %v324_v1 = vmul.f32 0.6931472, %v825_v52  ;;  %v349_v2 = vsub.f32 %v223_v17, %v333_v47  ;;  %v827_v18 = vpop.eup %826  ;;  %vm368_vm12 = vcmp.ge.s32.totalorder %v1081_v53, %v367_v59 }
 0x26f   :  { %v829_v34 = vpop.eup %828  ;;  %v326_v20 = vmul.f32 0.6931472, %v827_v18 }
 0x270   :  { %v336_v49 = vadd.f32 %v324_v1, %v1076_v51  ;;  %v357_v5 = vsel %vm341_vm4, %v349_v2, 0.0  ;;  %v330_v17 = vmul.f32 0.6931472, %v829_v34  ;;  %vm557_vm4 = vcmask 11272  }
 0x271   :  { %v432_v7 = vsel %vm431_vm5, %v357_v5, %v778_v63  ;;  %v337_v41 = vadd.f32 %v326_v20, %v1089_v62  ;;  %v369_v62 = vadd.s32 1, %v366_v25 }
 0x272   :  { %v352_v9 = vsub.f32 %v232_v26, %v336_v49  ;;  %v737_v10 = vpack.c.bf16 %v433_v8, %v432_v7  ;;  %v339_v29 = vadd.f32 %v330_v17, %v1085_v57  ;;  %v161_v57 = vld [vmem:[%s1294_s4 + $0x30] sm:$0xff] }
 0x273   :  { %vm347_vm11 = vcmp.eq.s32.totalorder %v161_v57, 1 }
 0x274   :  { %738 = vmatpush3.bf16.msra.mxu1 %v737_v10  ;;  %v360_v14 = vsel %vm344_vm7, %v352_v9, 0.0  ;;  %v355_v54 = vsub.f32 %v1172_v23, %v339_v29 }
 0x275   :  { %739 = vmatprep.subr.bf16.mxu1 %v869_v11  ;;  %v435_v51 = vsel %vm431_vm5, %v360_v14, %v784_v12 }
 0x276   :  { %v740_v40 = vpack.c.bf16 %v435_v51, %v434_v39  ;;  %v363_v63 = vsel %vm347_vm11, %v355_v54, 0.0 }
 0x278   :  { %741 = vmatpush3.bf16.msra.mxu1 %v740_v40 }
 0x279   :  { %742 = vmatprep.subr.bf16.mxu1 %v869_v11 }
 0x297   :  { %v316_v15 = vpop.xlane.xlu1 %315 }
 0x298   :  { %830 = vlog2.f32 %v316_v15 }
 0x29b   :  { %v310_v16 = vpop.xlane.xlu1 %309 }
 0x29c   :  { %832 = vlog2.f32 %v310_v16 }
 0x29f   :  { %v787_v33 = vpop.permute.xlu1 %786 }
 0x2a0   :  { %v789_v45 = vunpack.i.h.bf16 %v787_v33  ;;  %v788_v46 = vunpack.i.l.bf16 %v787_v33 }
 0x2a2   :  { %v831_v36 = vpop.eup %830 }
 0x2a3   :  { %v332_v22 = vmul.f32 0.6931472, %v831_v36 }
 0x2a5   :  { %v340_v26 = vadd.f32 %v332_v22, %v1135_v60  ;;  %v353_v60 = vsub.f32 %v1174_v24, %v337_v41  ;;  %v370_v24 = vmul.u32 16, %v369_v62 }
 0x2a6   :  { %v833_v43 = vpop.eup %832 }
 0x2a7   :  { %v328_v32 = vmul.f32 0.6931472, %v833_v43  ;;  %v356_v37 = vsub.f32 %v1176_v27, %v340_v26  ;;  %v361_v27 = vsel %vm345_vm8, %v353_v60, 0.0  ;;  %vm371_vm13 = vcmp.lt.s32.totalorder %v1081_v53, %v370_v24 }
 0x2a8   :  { %v436_v47 = vsel %vm431_vm5, %v361_v27, %v788_v46  ;;  %vm372_vm14 = vmand %vm368_vm12, %vm371_vm13 }
 0x2a9   :  { %v338_v31 = vadd.f32 %v328_v32, %v1140_v61  ;;  %v364_v42 = vsel %vm348_vm10, %v356_v37, 0.0  ;;  %v678_v1 = vsel %vm372_vm14, 1.0, %v867_v55 }
 0x2aa   :  { %v439_v23 = vsel %vm431_vm5, %v364_v42, %v794_v38 }
 0x2ab   :  { %v354_v58 = vsub.f32 %v1178_v28, %v338_v31  ;;  %v438_v28 = vsel %vm431_vm5, %v363_v63, %v793_v44 }
 0x2ac   :  { %v746_v0 = vpack.c.bf16 %v439_v23, %v438_v28 }
 0x2ad   :  { %v362_v61 = vsel %vm346_vm9, %v354_v58, 0.0 }
 0x2ae   :  { %v437_v52 = vsel %vm431_vm5, %v362_v61, %v789_v45  ;;  %vm639_vm5 = vcmask 0  }
 0x2af   :  { %v743_v19 = vpack.c.bf16 %v437_v52, %v436_v47 }
 0x2b1   :  { %744 = vmatpush3.bf16.msra.mxu1 %v743_v19 }
 0x2b2   :  { %745 = vmatprep.subr.bf16.mxu1 %v869_v11 }
 0x2b5   :  { %747 = vmatpush3.bf16.msra.mxu1 %v746_v0 }
 0x2b8   :  { %734 = vmatmul.mubr.msk.f32.vlgmr.msra.gmra.mrb[0].mxu1 %vm440_vm15, %v678_v1 }
 0x38b   :  { %v510_v21 = vpop.f32.mrb[0].mxu1 }
 0x38c   :  { %515 = vst.msk [vmem:[%s1297_s7] sm:$0xf] %vm514_vm0, %v510_v21  ;;  %vm516_vm2 = vcmp.gt.f32.partialorder %v510_v21, 0.0  ;;  %553 = vrot.lane.b32.xlu1 %v510_v21, %s868_s3  ;;  %v735_v53 = vpop.f32.mrb[1].mxu1  ;;  %v594_v31 = vsub.f32 0.0, %v510_v21 }
 0x38d   :  { %vm1237_vm1 = vmxor %vm516_vm2, %vm871_vm3  ;;  %v688_v2 = vsel %vm516_vm2, 1.0, %v867_v55 }
 0x38e   :  { %v689_v3 = vsel %vm1237_vm1, 1.0, %v867_v55 }
 0x38f   :  { %v795_v4 = vpack.i.bf16 %v689_v3, %v688_v2 }
 0x391   :  { %796 = vrot.lane.b32.xlu0 %v795_v4, %s872_s5 }
 0x3fe   :  { %v554_v49 = vpop.permute.xlu1 %553 }
 0x3ff   :  { %v556_v9 = vsel %vm516_vm2, %v554_v49, -1e+30 }
 0x400   :  { %v558_v10 = vsel %vm557_vm4, %v556_v9, -inf }
 0x403   :  { %v797_v48 = vpop.permute.xlu0 %796 }
 0x404   :  { %v799_v5 = vunpack.i.h.bf16 %v797_v48  ;;  %v798_v6 = vunpack.i.l.bf16 %v797_v48 }
 0x406   :  { %v541_v7 = vsel %vm514_vm0, %v799_v5, 0.0  ;;  %v524_v8 = vsel %vm514_vm0, %v798_v6, 0.0 }
 0x407   :  { %542 = vadd.xlane.f32.xlu0 %v541_v7  ;;  %525 = vadd.xlane.f32.xlu1 %v524_v8 }
 0x40b   :  { %559 = vmax.xlane.f32.xlu0 %v558_v10 }
 0x494   :  { %v543_v55 = vpop.xlane.xlu0 %542  ;;  %v526_v12 = vpop.xlane.xlu1 %525 }
 0x495   :  { %v544_v13 = vrot.slane %v543_v55, 4  ;;  %v527_v14 = vrot.slane %v526_v12, 4 }
 0x497   :  { %v545_v39 = vadd.f32 %v544_v13, %v543_v55  ;;  %v528_v51 = vadd.f32 %v527_v14, %v526_v12 }
 0x498   :  { %v560_v40 = vpop.xlane.xlu0 %559 }
 0x499   :  { %v546_v15 = vrot.slane %v545_v39, 2  ;;  %v529_v16 = vrot.slane %v528_v51, 2  ;;  %v561_v18 = vrot.slane %v560_v40, 4 }
 0x49b   :  { %v562_v34 = vmax.f32 %v560_v40, %v561_v18  ;;  %v530_v20 = vadd.f32 %v529_v16, %v528_v51  ;;  %v547_v36 = vadd.f32 %v546_v15, %v545_v39 }
 0x49d   :  { %v563_v17 = vrot.slane %v562_v34, 2  ;;  %v531_v22 = vrot.slane %v530_v20, 1  ;;  %v548_v25 = vrot.slane %v547_v36, 1 }
 0x49f   :  { %v532_v41 = vadd.f32 %v531_v22, %v530_v20  ;;  %v549_v26 = vadd.f32 %v548_v25, %v547_v36  ;;  %v564_v43 = vmax.f32 %v562_v34, %v563_v17 }
 0x4a1   :  { %748 = vpush %v532_v41  ;;  %v565_v30 = vrot.slane %v564_v43, 1 }
 0x4a2   :  { %750 = vpush %v549_v26 }
 0x4a3   :  { %v566_v29 = vmax.f32 %v564_v43, %v565_v30 }
 0x4a5   :  { %752 = vpush %v566_v29 }
 0x4d2   :  { %s1251_s7 = spop %748 }
 0x4d3   :  { %s1253_s18 = spop %750  ;;  %p534_p0 = scmp.gt.f32.partialorder %s1251_s7, 0.0 }
 0x4d4   :  { %p551_p1 = scmp.gt.f32.partialorder %s1253_s18, 0.0 }
 0x4d6   :  { %s1255_s19 = spop %752 }
 0x4d7   :  { %v568_v32 = vstv %s1255_s19 }
 0x4d8   :  { %v569_v33 = vsub.f32 %v556_v9, %v568_v32 }
 0x4da   :  { %v570_v35 = vmul.f32 1.442695, %v569_v33 }
 0x4dc   :  { %834 = vpow2.f32 %v570_v35 }
 0x4e6   :  { %v835_v50 = vpop.eup %834 }
 0x4e7   :  { %v572_v62 = vsel %vm516_vm2, %v835_v50, 0.0 }
 0x4e8   :  { %574 = vrot.lane.b32.xlu1 %v572_v62, %s872_s5 }
 0x55a   :  { %v575_v60 = vpop.permute.xlu1 %574 }
 0x55b   :  { %v577_v37 = vsel %vm514_vm0, %v575_v60, 0.0 }
 0x55c   :  { %578 = vadd.xlane.f32.xlu0 %v577_v37 }
 0x572   :  { %596 = vrot.lane.b32.xlu0 %v594_v31, %s868_s3 }
 0x5e9   :  { %v579_v57 = vpop.xlane.xlu0 %578 }
 0x5ea   :  { %v580_v45 = vrot.slane %v579_v57, 4 }
 0x5ec   :  { %v581_v46 = vadd.f32 %v580_v45, %v579_v57 }
 0x5ed   :  { %v597_v54 = vpop.permute.xlu0 %596 }
 0x5ee   :  { %v582_v56 = vrot.slane %v581_v46, 2  ;;  %v599_v58 = vsel %vm1237_vm1, %v597_v54, -1e+30 }
 0x5ef   :  { %v600_v59 = vsel %vm557_vm4, %v599_v58, -inf }
 0x5f0   :  { %601 = vmax.xlane.f32.xlu1 %v600_v59  ;;  %v583_v24 = vadd.f32 %v582_v56, %v581_v46 }
 0x5f2   :  { %v584_v38 = vrot.slane %v583_v24, 1 }
 0x5f4   :  { %v585_v27 = vadd.f32 %v584_v38, %v583_v24 }
 0x5f6   :  { %754 = vpush %v585_v27 }
 0x627   :  { %s755_s20 = spop %754 }
 0x628   :  { %s587_s0 = smax.f32 %s873_s21, %s755_s20 }
 0x629   :  { %v588_v61 = vstv %s587_s0 }
 0x62a   :  { %836 = vlog2.f32 %v588_v61 }
 0x634   :  { %v837_v42 = vpop.eup %836 }
 0x635   :  { %v590_v44 = vmul.f32 0.6931472, %v837_v42 }
 0x637   :  { %756 = vpush %v590_v44 }
 0x668   :  { %s757_s22 = spop %756 }
 0x669   :  { %s592_s3 = sadd.f32 %s757_s22, %s1255_s19 }
 0x66b   :  { %s593_s25 = ssub.f32 0.0, %s592_s3 }
 0x66d   :  { %s1301_s25 = smov (!%p534_p0, %s593_s25), 0.0 }
 0x67d   :  { %v602_v47 = vpop.xlane.xlu1 %601 }
 0x67e   :  { %v603_v52 = vrot.slane %v602_v47, 4 }
 0x680   :  { %v604_v19 = vmax.f32 %v602_v47, %v603_v52 }
 0x682   :  { %v605_v63 = vrot.slane %v604_v19, 2 }
 0x684   :  { %v606_v23 = vmax.f32 %v604_v19, %v605_v63 }
 0x686   :  { %v607_v28 = vrot.slane %v606_v23, 1 }
 0x688   :  { %v608_v0 = vmax.f32 %v606_v23, %v607_v28 }
 0x68a   :  { %758 = vpush %v608_v0 }
 0x6bb   :  { %s1266_s2 = spop %758 }
 0x6bc   :  { %v610_v1 = vstv %s1266_s2 }
 0x6bd   :  { %v611_v21 = vsub.f32 %v599_v58, %v610_v1 }
 0x6bf   :  { %v612_v53 = vmul.f32 1.442695, %v611_v21 }
 0x6c1   :  { %838 = vpow2.f32 %v612_v53 }
 0x6cb   :  { %v839_v2 = vpop.eup %838 }
 0x6cc   :  { %v614_v3 = vsel %vm1237_vm1, %v839_v2, 0.0 }
 0x6cd   :  { %616 = vrot.lane.b32.xlu0 %v614_v3, %s872_s5 }
 0x73f   :  { %v617_v4 = vpop.permute.xlu0 %616 }
 0x740   :  { %v619_v48 = vsel %vm514_vm0, %v617_v4, 0.0 }
 0x741   :  { %620 = vadd.xlane.f32.xlu0 %v619_v48 }
 0x7ce   :  { %v621_v49 = vpop.xlane.xlu0 %620 }
 0x7cf   :  { %v622_v5 = vrot.slane %v621_v49, 4 }
 0x7d1   :  { %v623_v6 = vadd.f32 %v622_v5, %v621_v49 }
 0x7d3   :  { %v624_v7 = vrot.slane %v623_v6, 2 }
 0x7d5   :  { %v625_v8 = vadd.f32 %v624_v7, %v623_v6 }
 0x7d7   :  { %v626_v9 = vrot.slane %v625_v8, 1 }
 0x7d9   :  { %v627_v10 = vadd.f32 %v626_v9, %v625_v8 }
 0x7db   :  { %760 = vpush %v627_v10 }
 0x80c   :  { %s761_s23 = spop %760 }
 0x80d   :  { %s629_s24 = smax.f32 %s873_s21, %s761_s23 }
 0x80e   :  { %v630_v11 = vstv %s629_s24 }
 0x80f   :  { %840 = vlog2.f32 %v630_v11 }
 0x819   :  { %v841_v55 = vpop.eup %840 }
 0x81a   :  { %v632_v12 = vmul.f32 0.6931472, %v841_v55 }
 0x81c   :  { %762 = vpush %v632_v12 }
 0x84d   :  { %s763_s26 = spop %762 }
 0x84e   :  { %s634_s27 = sadd.f32 %s763_s26, %s1266_s2 }
 0x850   :  { %s1303_s27 = smov (!%p551_p1, %s634_s27), 0.0 }
 0x851   :  { %s637_s30 = sadd.f32 %s1303_s27, %s1301_s25 }
 0x853   :  { %v638_v13 = vstv %s637_s30 }
 0x854   :  { %640 = vst.msk [vmem:[#allocation2] sm:$0x1] %vm639_vm5, %v638_v13 }
 0x855   :  { %853 = shalt.err (!%p850_p6)
}
 0x856   :  { %s854_s12 = scalar_lea.hbm %s1296_s6, 16 }
 0x857   :  { %p855_p7 = scmp.ne.s32.totalorder %s1296_s6, %s854_s12  ;;  %p858_p8 = scmp.lt.u32.totalorder %s854_s12, %s1296_s6 }
 0x859   :  { %p860_p9 = pnand %p858_p8, %p855_p7 }
 0x85b   :  { %863 = shalt.err (!%p860_p9)
}
 0x85c   :  { %652 = dma.vmem_to_hbm [thread:$0]  %s650_s29, 16, %s1296_s6, [#allocation3]  }
 0x85d   :  { %864 = dma.done.wait [#allocation3], 16  }
 0x85e   :  { %865 = vsyncadd [#allocation3], 4294967280 }
 0x85f   :  { %662 = vsyncpa [#allocation3], 1 }

// kernel: model_for_distant_supervision_forward.2
= control target key start
LH: loop header
LB: loop body
LE: loop exit
PB: predicated region body
PF: predicated region fallthrough
CT: control target
= control target key end

     0   :  { %s2035_s21 = smov 0   ;;  %s2037_s22 = smov 0   ;;  %s2303_s0 = inlined_call_operand.vmem [shape: f32[4,16,32], index: 0, kind: input, shape index: {}]   ;;  %s2304_s1 = inlined_call_operand.vmem [shape: f32[4,1,16], index: 1, kind: input, shape index: {}]   ;;  %s2305_s2 = inlined_call_operand.vmem [shape: f32[1,32], index: 2, kind: input, shape index: {}]   ;;  %s2306_s3 = inlined_call_operand.vmem [shape: f32[1,32], index: 3, kind: input, shape index: {}]   ;;  %s2307_s4 = inlined_call_operand.vmem [shape: bf16[2,32,96], index: 4, kind: input, shape index: {}]   ;;  %s2308_s5 = inlined_call_operand.vmem [shape: f32[2,1,96], index: 5, kind: input, shape index: {}]   ;;  %s2309_s6 = inlined_call_operand.vmem [shape: bf16[2,32,32], index: 6, kind: input, shape index: {}]   ;;  %s2310_s7 = inlined_call_operand.vmem [shape: f32[2,1,32], index: 7, kind: input, shape index: {}]   ;;  %s2311_s8 = inlined_call_operand.vmem [shape: f32[2,1,32], index: 8, kind: input, shape index: {}]   ;;  %s2312_s9 = inlined_call_operand.vmem [shape: f32[2,1,32], index: 9, kind: input, shape index: {}]   ;;  %s2313_s10 = inlined_call_operand.vmem [shape: bf16[2,32,64], index: 10, kind: input, shape index: {}]   ;;  %s2314_s11 = inlined_call_operand.vmem [shape: f32[2,1,64], index: 11, kind: input, shape index: {}]   ;;  %s2315_s12 = inlined_call_operand.vmem [shape: bf16[2,64,32], index: 12, kind: input, shape index: {}]   ;;  %s2316_s13 = inlined_call_operand.vmem [shape: f32[2,1,32], index: 13, kind: input, shape index: {}]   ;;  %s2317_s14 = inlined_call_operand.vmem [shape: f32[2,1,32], index: 14, kind: input, shape index: {}]   ;;  %s2318_s15 = inlined_call_operand.vmem [shape: f32[2,1,32], index: 15, kind: input, shape index: {}]   ;;  %s2319_s16 = inlined_call_operand.vmem [shape: f32[4,16,32], index: 16, kind: output, shape index: {}]  }
   0x1   :  { %2325 = sst [smem:[#allocation10_spill]] %s2303_s0  ;;  %s2039_s23 = smov 0  }
   0x2   :  { %2326 = sst [smem:[#allocation11_spill]] %s2304_s1  ;;  %s2041_s24 = smov 0  }
   0x3   :  { %2327 = sst [smem:[#allocation12_spill]] %s2305_s2  ;;  %s2043_s25 = smov 0  }
   0x4   :  { %2328 = sst [smem:[#allocation13_spill]] %s2306_s3 }
   0x5   :  { %2329 = sst [smem:[#allocation14_spill]] %s2307_s4 }
   0x6   :  { %2330 = sst [smem:[#allocation15_spill]] %s2309_s6 }
   0x7   :  { %2331 = sst [smem:[#allocation16_spill]] %s2313_s10 }
   0x8   :  { %2332 = sst [smem:[#allocation17_spill]] %s2314_s11 }
   0x9   :  { %2333 = sst [smem:[#allocation18_spill]] %s2318_s15 }
   0xa   :  { %2334 = sst [smem:[#allocation19_spill]] %s2319_s16 }
   0xb LB: > { %2335 = sst [smem:[#allocation3_spill]] %s1924_s21  ;;  %s35_s26 = sadd.s32 1, %s1932_s23  ;;  %s1940_s25 = sphi %s2043_s25, %s26_s25   ;;  %s1936_s24 = sphi %s2041_s24, %s2368_s24   ;;  %s1932_s23 = sphi %s2039_s23, %s2367_s23   ;;  %s1928_s22 = sphi %s2037_s22, %s2366_s22   ;;  %s1924_s21 = sphi %s2035_s21, %s2365_s21  }
   0xc   : > { %2336 = sst [smem:[#allocation4_spill]] %s1932_s23  ;;  %s38_s27 = sadd.s32 1, %s1936_s24 }
   0xd   : > { %2337 = sst [smem:[#allocation5_spill]] %s1936_s24  ;;  %p36_p0 = scmp.ge.s32.totalorder %s35_s26, 2 }
   0xe   : > { %2338 = sst [smem:[#allocation6_spill]] %s1940_s25  ;;  %p1673_p1 = scmp.ge.s32.totalorder %s1940_s25, 1 }
   0xf   : > { %p586_p2 = scmp.lt.s32.totalorder %s1940_s25, 9  ;;  %s2370_s26 = smov (%p36_p0, %s35_s26), 0 }
  0x10   : > { %2339 = sst [smem:[#allocation7_spill]] %s2370_s26  ;;  %s2372_s27 = smov (!%p36_p0, %s38_s27), %s1936_s24 }
  0x11   : > { %p587_p3 = pnand %p1673_p1, %p586_p2  ;;  %p40_p4 = scmp.ge.s32.totalorder %s2372_s27, 4 }
  0x13   : > { %s2374_s27 = smov (%p40_p4, %s2372_s27), 0  ;;  %590 = sbr.rel (%p587_p3) target bundleno = 2902 (0xb56), region = 84 }
  0x14   : > { %2340 = sst [smem:[#allocation8_spill]] %s2374_s27 }
  0x1a   : > { %p683_p5 = scmp.lt.s32.totalorder %s1928_s22, 3  ;;  %p691_p6 = scmp.lt.s32.totalorder %s1924_s21, 1 }
  0x1b   : > { %s2343_s20 = sld [smem:[#allocation10_spill]]  ;;  %s2344_s4 = sld [smem:[#allocation14_spill]] }
  0x1c   : > { %s2376_s22 = smov (!%p683_p5, %s1928_s22), 3  ;;  %s2345_s6 = sld [smem:[#allocation15_spill]] }
  0x1d   : > { %2341 = sst [smem:[#allocation9_spill]] %s2376_s22  ;;  %s1719_s29 = sshll.u32 %s2376_s22, 4 }
  0x1e   : > { %s2071_s28 = scalar_select %p691_p6, %s1924_s21, 1 }
  0x1f   : > { %s2346_s10 = sld [smem:[#allocation16_spill]]  ;;  %s2349_s21 = sld [smem:[#allocation19_spill]] }
  0x20   : > { %s1720_s26 = sshll.u32 %s2071_s28, 4  ;;  %s728_s18 = scalar_lea.vmem %s2316_s13, %s2071_s28 }
  0x21   : > { %s687_s27 = scalar_lea.vmem %s2343_s20, %s1719_s29  ;;  %s2085_s25 = scalar_lea.vmem %s2344_s4, %s1720_s26 }
  0x22   : > { %s2094_s30 = scalar_lea.vmem %s2345_s6, %s1720_s26  ;;  %s1723_s6 = sshll.u32 %s2071_s28, 5 }
  0x23   : > { %s2125_s1 = scalar_lea.vmem %s2315_s12, %s1723_s6  ;;  %s731_s22 = scalar_lea.vmem %s2317_s14, %s2071_s28 }
  0x24   : > { %s2348_s4 = sld [smem:[#allocation18_spill]]  ;;  %s2350_s17 = sld [smem:[#allocation3_spill]] }
  0x25   : > { %s2111_s3 = scalar_lea.vmem %s2346_s10, %s1720_s26  ;;  %s2138_s11 = scalar_lea.vmem %s2349_s21, %s1719_s29 }
  0x2a   : > { %s734_s10 = scalar_lea.vmem %s2348_s4, %s2071_s28  ;;  %p1686_p7 = scmp.ne.s32.totalorder %s2350_s17, 0 }
  0x2b   : > { %v745_v0 = vld [vmem:[%s687_s27] sm:$0xff] (!%p1686_p7)  ;;  %vm749_vm0 = vcmask (!%p1686_p7), 261120   ;;  %v746_v1 = vld [vmem:[%s687_s27 + $0x8] sm:$0xff] (!%p1686_p7)  ;;  %s2351_s21 = sld [smem:[#allocation12_spill]] (!%p1686_p7)  ;;  %s2352_s0 = sld [smem:[#allocation13_spill]] (!%p1686_p7) }
  0x2c   : > { %744 = sbr.rel (%p1686_p7) target bundleno = 362 (0x16a), region = 88  ;;  %v750_v2 = vsel (!%p1686_p7), %vm749_vm0, %v745_v0, 0.0  ;;  %v753_v3 = vsel (!%p1686_p7), %vm749_vm0, %v746_v1, 0.0 }
  0x2d   : > { %751 = vadd.xlane.f32.xlu0 (!%p1686_p7), %v750_v2 }
  0x31   : > { %754 = vadd.xlane.f32.xlu0 (!%p1686_p7), %v753_v3  ;;  %v1687_v21 = vld [vmem:[%s2351_s21] ss:$0 sm:$0xff] (!%p1686_p7) }
  0x32   : > { %v1688_v23 = vld [vmem:[%s2352_s0] ss:$0 sm:$0xff] (!%p1686_p7) }
  0xba   : > { %v752_v4 = vpop.xlane.xlu0 %751 }
  0xbb   : > { %v757_v5 = vmul.f32 0.03125, %v752_v4 }
  0xbd   : > { %v759_v6 = vsub.f32 %v745_v0, %v757_v5 }
  0xbe   : > { %v755_v7 = vpop.xlane.xlu0 %754 }
  0xbf   : > { %v758_v8 = vmul.f32 0.03125, %v755_v7  ;;  %v761_v9 = vmul.f32 %v759_v6, %v759_v6 }
  0xc1   : > { %v760_v10 = vsub.f32 %v746_v1, %v758_v8  ;;  %v763_v11 = vsel %vm749_vm0, %v761_v9, 0.0 }
  0xc2   : > { %764 = vadd.xlane.f32.xlu1 %v763_v11 }
  0xc3   : > { %v762_v12 = vmul.f32 %v760_v10, %v760_v10 }
  0xc5   : > { %v766_v13 = vsel %vm749_vm0, %v762_v12, 0.0 }
  0xc6   : > { %767 = vadd.xlane.f32.xlu1 %v766_v13 }
 0x14f   : > { %v765_v14 = vpop.xlane.xlu1 %764 }
 0x150   : > { %v769_v15 = vmul.f32 0.03125, %v765_v14 }
 0x152   : > { %v771_v16 = vadd.f32 1e-12, %v769_v15 }
 0x153   : > { %v768_v17 = vpop.xlane.xlu1 %767 }
 0x154   : > { %1855 = vrsqrt.f32 %v771_v16  ;;  %v770_v18 = vmul.f32 0.03125, %v768_v17 }
 0x156   : > { %v772_v19 = vadd.f32 1e-12, %v770_v18 }
 0x158   : > { %1857 = vrsqrt.f32 %v772_v19 }
 0x15e   : > { %v1856_v20 = vpop.eup %1855 }
 0x15f   : > { %v775_v22 = vmul.f32 %v1856_v20, %v759_v6 }
 0x161   : > { %v783_v24 = vmul.f32 %v1687_v21, %v775_v22 }
 0x162   : > { %v1858_v25 = vpop.eup %1857 }
 0x163   : > { %v791_v26 = vadd.f32 %v1688_v23, %v783_v24  ;;  %v776_v27 = vmul.f32 %v1858_v25, %v760_v10 }
 0x165   : > { %793 = vst.msk [vmem:[#allocation2] sm:$0xff] %vm749_vm0, %v791_v26  ;;  %v784_v28 = vmul.f32 %v1687_v21, %v776_v27 }
 0x167   : > { %v792_v29 = vadd.f32 %v1688_v23, %v784_v28 }
 0x169   : > { %794 = vst.msk [vmem:[#allocation2 + $0x8] sm:$0xff] %vm749_vm0, %v792_v29 }
 0x16a PF: > { %v1864_v30 = vld [vmem:[%s2085_s25] sm:$0xff]   ;;  %v1942_v31 = vmov 0.0   ;;  %v1865_v32 = vld [vmem:[%s2085_s25 + $0x8] sm:$0xff]   ;;  %vm1943_vm1 = vmmov 0   ;;  %vm821_vm2 = vcmask 261120   ;;  %s2353_s20 = scalar_lea.vmem %s2308_s5, %s2071_s28  ;;  %s1944_s23 = smov 112  }
 0x16b   : > { %1747 = vmatprep.subr.bf16.mxu0 %v1942_v31  ;;  %1755 = vmatprep.subr.bf16.mxu1 %v1942_v31  ;;  %v1689_v36 = vld [vmem:[%s2353_s20] ss:$0 sm:$0xff]  ;;  %s1945_s24 = smov 96   ;;  %s1946_s26 = smov 80   ;;  %vm871_vm3 = vcmask 130048   ;;  %vm1375_vm4 = vcmask 523264  }
 0x16c   : > { %1748 = vmatpush3.bf16.msra.mxu0 %v1864_v30  ;;  %1751 = vmatprep.mubr.msk.bf16.mxu0 %vm1943_vm1, %v1942_v31  ;;  %v2159_v33 = vld [vmem:[#allocation2] sm:$0xff]  ;;  %s2354_s2 = sld [smem:[#allocation9_spill]]  ;;  %s2355_s17 = sld [smem:[#allocation11_spill]] }
 0x16d   : > { %1749 = vmatprep.subr.bf16.mxu0 %v1942_v31  ;;  %1757 = vmatprep.mubr.msk.bf16.mxu1 %vm1943_vm1, %v1942_v31  ;;  %s1947_s6 = smov 48   ;;  %s1948_s21 = smov 64  }
 0x16e   : > { %s1949_s27 = smov 16   ;;  %s2357_s0 = scalar_lea.vmem %s2310_s7, %s2071_s28 }
 0x16f   : > { %s2360_s15 = sld [smem:[#allocation17_spill]] }
 0x170   : > { %v2161_v34 = vld [vmem:[#allocation2 + $0x8] sm:$0xff]  ;;  %1750 = vmatpush3.bf16.msra.mxu0 %v1865_v32 }
 0x171   : > { %v797_v35 = vpack.c.bf16 %v2161_v34, %v2159_v33  ;;  %1761 = vmatprep.subr.bf16.mxu0 %v1942_v31 }
 0x172   : > { %s2356_s4 = scalar_lea.vmem %s2355_s17, %s2354_s2 }
 0x173   : > { %1752 = vmatmul.mubr.msk.bf16.vlgmr.msra.gmra.mrb[0].mxu0 %vm821_vm2, %v797_v35  ;;  %v1694_v50 = vld [vmem:[%s2356_s4] ss:$0 sm:$0xff] }
 0x174   : > { %1763 = vmatprep.mubr.msk.bf16.mxu0 %vm1943_vm1, %v1942_v31 }
 0x175   : > { %s2361_s16 = scalar_lea.vmem %s2360_s15, %s2071_s28 }
 0x246   : > { %v859_v37 = vpop.f32.mrb[0].mxu0 }
 0x247   : > { %v1753_v38 = vpop.f32.mrb[1].mxu0  ;;  %v860_v40 = vadd.f32 %v1689_v36, %v859_v37 }
 0x248   : > { %v862_v39 = vpop.f32.mrb[2].mxu0 }
 0x249   : > { %v863_v41 = vadd.f32 %v1689_v36, %v862_v39  ;;  %v1754_v42 = vpop.f32.mrb[3].mxu0 }
 0x24b   : > { %v2177_v43 = vpack.c.bf16 %v863_v41, %v860_v40 }
 0x24d   : > { %999 = vrot.lane.b32.xlu1 %v2177_v43, %s1944_s23  ;;  %869 = vrot.lane.b32.xlu0 %v2177_v43, %s1945_s24  ;;  %s2359_s24 = scalar_lea.vmem %s2312_s9, %s2071_s28 }
 0x251   : > { %1001 = vrot.lane.b32.xlu0 %v2177_v43, %s1946_s26 }
 0x2bf   : > { %v870_v44 = vpop.permute.xlu0 %869  ;;  %v1000_v48 = vpop.permute.xlu1 %999 }
 0x2c0   : > { %v876_v45 = vsel %vm871_vm3, %v870_v44, 0 }
 0x2c1   : > { %1756 = vmatpush3.bf16.xpose.msra.mxu1 %v876_v45  ;;  %v1866_v45 = vld [vmem:[%s2094_s30] sm:$0xff]  }
 0x2c2   : > { %1767 = vmatprep.subr.bf16.mxu1 %v1942_v31 }
 0x2c3   : > { %v1002_v46 = vpop.permute.xlu0 %1001 }
 0x2c4   : > { %v1007_v47 = vsel %vm871_vm3, %v1002_v46, 0 }
 0x2c8   : > { %1758 = vmatmul.mubr.msk.bf16.vlgmr.msra.gmra.mrb[0].mxu1 %vm871_vm3, %v2177_v43 }
 0x2c9   : > { %1768 = vmatpush3.bf16.xpose.msra.mxu1 %v1007_v47  ;;  %1769 = vmatprep.mubr.msk.bf16.mxu1 %vm1943_vm1, %v1942_v31 }
 0x2ca   : > { %1779 = vmatprep.subr.bf16.mxu1 %v1942_v31 }
 0x2d0   : > { %1770 = vmatmul.mubr.msk.bf16.vlgmr.msra.gmra.mrb[4].mxu1 %vm871_vm3, %v1000_v48  ;;  %v1867_v48 = vld [vmem:[%s2094_s30 + $0x8] sm:$0xff]   ;;  %s2363_s30 = sld [smem:[#allocation3_spill]] }
 0x2d1   : > { %1783 = vmatprep.mubr.msk.bf16.mxu1 %vm1943_vm1, %v1942_v31  ;;  %1780 = vmatpush3.bf16.msra.mxu1 %v1866_v45 }
 0x2d2   : > { %1781 = vmatprep.subr.bf16.mxu1 %v1942_v31 }
 0x2d5   : > { %1782 = vmatpush3.bf16.msra.mxu1 %v1867_v48 }
 0x2d6   : > { %1795 = vmatprep.subr.bf16.mxu1 %v1942_v31  ;;  %p1716_p8 = scmp.ne.s32.totalorder %s2363_s30, 1 }
 0x39b   : > { %v912_v49 = vpop.f32.mrb[0].mxu1 }
 0x39c   : > { %v919_v51 = vmul.f32 0.25, %v912_v49  ;;  %v1759_v52 = vpop.f32.mrb[1].mxu1 }
 0x39d   : > { %v915_v53 = vpop.f32.mrb[2].mxu1 }
 0x39e   : > { %v920_v54 = vmul.f32 0.25, %v915_v53  ;;  %v1760_v55 = vpop.f32.mrb[3].mxu1  ;;  %v927_v56 = vadd.f32 %v1694_v50, %v919_v51 }
 0x3a0   : > { %v929_v57 = vsel %vm871_vm3, %v927_v56, -inf  ;;  %v928_v58 = vadd.f32 %v1694_v50, %v920_v54 }
 0x3a1   : > { %930 = vmax.xlane.f32.xlu1 %v929_v57 }
 0x3a2   : > { %v932_v59 = vsel %vm871_vm3, %v928_v58, -inf }
 0x3a3   : > { %933 = vmax.xlane.f32.xlu0 %v932_v59  ;;  %v1043_v60 = vpop.f32.mrb[4].mxu1 }
 0x3a4   : > { %v1050_v61 = vmul.f32 0.25, %v1043_v60  ;;  %v1771_v62 = vpop.f32.mrb[5].mxu1 }
 0x3a5   : > { %v1046_v63 = vpop.f32.mrb[6].mxu1  ;;  %v1698_v62 = vld [vmem:[%s2357_s0] ss:$0 sm:$0xff] }
 0x3a6   : > { %v1051_v0 = vmul.f32 0.25, %v1046_v63  ;;  %v1772_v1 = vpop.f32.mrb[7].mxu1  ;;  %v1052_v2 = vadd.f32 %v1694_v50, %v1050_v61 }
 0x3a8   : > { %v1054_v3 = vsel %vm871_vm3, %v1052_v2, -inf  ;;  %v1053_v4 = vadd.f32 %v1694_v50, %v1051_v0 }
 0x3a9   : > { %1055 = vmax.xlane.f32.xlu0 %v1054_v3 }
 0x3aa   : > { %v1057_v5 = vsel %vm871_vm3, %v1053_v4, -inf }
 0x3ab   : > { %1058 = vmax.xlane.f32.xlu1 %v1057_v5 }
 0x42e   : > { %v931_v6 = vpop.xlane.xlu1 %930 }
 0x42f   : > { %v935_v7 = vsub.f32 %v927_v56, %v931_v6 }
 0x430   : > { %v934_v8 = vpop.xlane.xlu0 %933 }
 0x431   : > { %v937_v9 = vmul.f32 1.442695, %v935_v7  ;;  %v936_v10 = vsub.f32 %v928_v58, %v934_v8 }
 0x433   : > { %1874 = vpow2.f32 %v937_v9  ;;  %v939_v11 = vmul.f32 1.442695, %v936_v10 }
 0x435   : > { %1876 = vpow2.f32 %v939_v11 }
 0x436   : > { %v1056_v12 = vpop.xlane.xlu0 %1055 }
 0x437   : > { %v1060_v13 = vsub.f32 %v1052_v2, %v1056_v12 }
 0x438   : > { %v1059_v14 = vpop.xlane.xlu1 %1058 }
 0x439   : > { %v1062_v15 = vmul.f32 1.442695, %v1060_v13  ;;  %v1061_v16 = vsub.f32 %v1053_v4, %v1059_v14 }
 0x43b   : > { %1878 = vpow2.f32 %v1062_v15  ;;  %v1064_v17 = vmul.f32 1.442695, %v1061_v16 }
 0x43d   : > { %v1875_v18 = vpop.eup %1874  ;;  %1880 = vpow2.f32 %v1064_v17 }
 0x43e   : > { %v941_v19 = vsel %vm871_vm3, %v1875_v18, 0.0 }
 0x43f   : > { %v1877_v20 = vpop.eup %1876  ;;  %942 = vadd.xlane.f32.xlu0 %v941_v19 }
 0x440   : > { %v944_v21 = vsel %vm871_vm3, %v1877_v20, 0.0 }
 0x441   : > { %945 = vadd.xlane.f32.xlu1 %v944_v21 }
 0x445   : > { %v1879_v22 = vpop.eup %1878 }
 0x446   : > { %v1066_v23 = vsel %vm871_vm3, %v1879_v22, 0.0 }
 0x447   : > { %v1881_v24 = vpop.eup %1880  ;;  %1067 = vadd.xlane.f32.xlu0 %v1066_v23 }
 0x448   : > { %v1069_v25 = vsel %vm871_vm3, %v1881_v24, 0.0 }
 0x449   : > { %1070 = vadd.xlane.f32.xlu1 %v1069_v25 }
 0x45a   : > { %1077 = vrot.lane.b32.xlu1 %v2177_v43, %s1947_s6 }
 0x45d   : > { %952 = vrot.lane.b32.xlu0 %v2177_v43, %s1948_s21 }
 0x4cc   : > { %v943_v26 = vpop.xlane.xlu0 %942 }
 0x4cd   : > { %1882 = vrcp.f32 %v943_v26 }
 0x4ce   : > { %v946_v27 = vpop.xlane.xlu1 %945 }
 0x4cf   : > { %1884 = vrcp.f32 %v946_v27 }
 0x4d4   : > { %v1068_v28 = vpop.xlane.xlu0 %1067 }
 0x4d5   : > { %1886 = vrcp.f32 %v1068_v28 }
 0x4d6   : > { %v1071_v29 = vpop.xlane.xlu1 %1070 }
 0x4d7   : > { %v1883_v30 = vpop.eup %1882  ;;  %1888 = vrcp.f32 %v1071_v29 }
 0x4d8   : > { %v953_v32 = vpop.permute.xlu0 %952  ;;  %v949_v36 = vmul.f32 %v1883_v30, %v1875_v18  ;;  %v1869_v18 = vld [vmem:[%s2111_s3 + $0x8] sm:$0xff]  }
 0x4d9   : > { %v1885_v35 = vpop.eup %1884  ;;  %1762 = vmatpush3.bf16.msra.mxu0 %v953_v32  ;;  %v1703_v32 = vld [vmem:[%s2359_s24] ss:$0 sm:$0xff] }
 0x4da   : > { %v950_v37 = vmul.f32 %v1885_v35, %v1877_v20  ;;  %1773 = vmatprep.subr.bf16.mxu0 %v1942_v31  ;;  %v1078_v39 = vpop.permute.xlu1 %1077 }
 0x4dc   : > { %v951_v38 = vpack.c.bf16 %v950_v37, %v949_v36 }
 0x4de   : > { %1764 = vmatmul.mubr.msk.bf16.vlgmr.msra.gmra.mrb[4].mxu0 %vm871_vm3, %v951_v38 }
 0x4df   : > { %v1887_v40 = vpop.eup %1886  ;;  %1774 = vmatpush3.bf16.msra.mxu0 %v1078_v39  ;;  %1775 = vmatprep.mubr.msk.bf16.mxu0 %vm1943_vm1, %v1942_v31  ;;  %v1870_v39 = vld [vmem:[%s2125_s1] sm:$0xff]  }
 0x4e0   : > { %1787 = vmatprep.subr.bf16.mxu0 %v1942_v31  ;;  %v1074_v42 = vmul.f32 %v1887_v40, %v1879_v22  ;;  %v1871_v40 = vld [vmem:[%s2125_s1 + $0x8] sm:$0xff]  }
 0x4e1   : > { %v1889_v41 = vpop.eup %1888 }
 0x4e2   : > { %v1075_v43 = vmul.f32 %v1889_v41, %v1881_v24  ;;  %v1872_v41 = vld [vmem:[%s2125_s1 + $0x10] sm:$0xff]  }
 0x4e4   : > { %v1076_v44 = vpack.c.bf16 %v1075_v43, %v1074_v42  ;;  %v1873_v42 = vld [vmem:[%s2125_s1 + $0x18] sm:$0xff]   ;;  %v1704_v43 = vld [vmem:[%s2361_s16] ss:$0 sm:$0xff] }
 0x4e6   : > { %1776 = vmatmul.mubr.msk.bf16.vlgmr.msra.gmra.mrb[8].mxu0 %vm871_vm3, %v1076_v44 }
 0x4e7   : > { %1791 = vmatprep.mubr.msk.bf16.mxu0 %vm1943_vm1, %v1942_v31 }
 0x5b1   : > { %v992_v46 = vpop.f32.mrb[4].mxu0 }
 0x5b2   : > { %v1765_v47 = vpop.f32.mrb[5].mxu0 }
 0x5b3   : > { %v995_v49 = vpop.f32.mrb[6].mxu0 }
 0x5b4   : > { %v1766_v50 = vpop.f32.mrb[7].mxu0 }
 0x5b9   : > { %v1117_v51 = vpop.f32.mrb[8].mxu0 }
 0x5ba   : > { %v1777_v52 = vpop.f32.mrb[9].mxu0 }
 0x5bb   : > { %v1120_v53 = vpop.f32.mrb[10].mxu0 }
 0x5bc   : > { %v1859_v54 = vpack.i.bf16 %v1120_v53, %v1117_v51  ;;  %v1778_v55 = vpop.f32.mrb[11].mxu0 }
 0x5be   : > { %1860 = vrot.lane.b32.xlu1 %v1859_v54, %s1949_s27 }
 0x630   : > { %v1861_v56 = vpop.permute.xlu1 %1860 }
 0x631   : > { %v1863_v57 = vunpack.i.h.bf16 %v1861_v56  ;;  %v1862_v58 = vunpack.i.l.bf16 %v1861_v56 }
 0x633   : > { %v1133_v59 = vsel %vm871_vm3, %v995_v49, %v1863_v57  ;;  %v1132_v60 = vsel %vm871_vm3, %v992_v46, %v1862_v58 }
 0x634   : > { %v1134_v61 = vpack.c.bf16 %v1133_v59, %v1132_v60 }
 0x636   : > { %1784 = vmatmul.mubr.msk.bf16.vlgmr.msra.gmra.mrb[8].mxu1 %vm821_vm2, %v1134_v61 }
 0x637   : > { %1803 = vmatprep.mubr.msk.bf16.mxu1 %vm1943_vm1, %v1942_v31  ;;  %1796 = vmatpush3.bf16.msra.mxu1 %v1870_v39 }
 0x638   : > { %1797 = vmatprep.subr.bf16.mxu1 %v1942_v31 }
 0x63b   : > { %1798 = vmatpush3.bf16.msra.mxu1 %v1871_v40 }
 0x63c   : > { %1799 = vmatprep.subr.bf16.mxu1 %v1942_v31 }
 0x63f   : > { %1800 = vmatpush3.bf16.msra.mxu1 %v1872_v41 }
 0x640   : > { %1801 = vmatprep.subr.bf16.mxu1 %v1942_v31 }
 0x643   : > { %1802 = vmatpush3.bf16.msra.mxu1 %v1873_v42 }
 0x709   : > { %v1195_v63 = vpop.f32.mrb[8].mxu1 }
 0x70a   : > { %v1196_v0 = vadd.f32 %v1698_v62, %v1195_v63  ;;  %v1785_v1 = vpop.f32.mrb[9].mxu1 }
 0x70b   : > { %v1198_v2 = vpop.f32.mrb[10].mxu1 }
 0x70c   : > { %v1199_v3 = vadd.f32 %v1698_v62, %v1198_v2  ;;  %v1786_v4 = vpop.f32.mrb[11].mxu1  ;;  %v1202_v5 = vadd.f32 %v1196_v0, %v2159_v33 }
 0x70d   : > { %v1708_v4 = vld [vmem:[%s728_s18] ss:$0 sm:$0xff] }
 0x70e   : > { %v1206_v6 = vsel %vm821_vm2, %v1202_v5, 0.0  ;;  %v1203_v7 = vadd.f32 %v1199_v3, %v2161_v34  ;;  %v1868_v34 = vld [vmem:[%s2111_s3] sm:$0xff]   ;;  %s2358_s3 = scalar_lea.vmem %s2311_s8, %s2071_s28 }
 0x70f   : > { %1207 = vadd.xlane.f32.xlu0 %v1206_v6  ;;  %1788 = vmatpush3.bf16.msra.mxu0 %v1868_v34  ;;  %v1702_v27 = vld [vmem:[%s2358_s3] ss:$0 sm:$0xff] }
 0x710   : > { %v1209_v8 = vsel %vm821_vm2, %v1203_v7, 0.0  ;;  %1789 = vmatprep.subr.bf16.mxu0 %v1942_v31 }
 0x711   : > { %1210 = vadd.xlane.f32.xlu1 %v1209_v8 }
 0x713   : > { %1790 = vmatpush3.bf16.msra.mxu0 %v1869_v18 }
 0x79c   : > { %v1208_v9 = vpop.xlane.xlu0 %1207 }
 0x79d   : > { %v1213_v10 = vmul.f32 0.03125, %v1208_v9 }
 0x79e   : > { %v1211_v11 = vpop.xlane.xlu1 %1210 }
 0x79f   : > { %v1215_v12 = vsub.f32 %v1202_v5, %v1213_v10  ;;  %v1214_v13 = vmul.f32 0.03125, %v1211_v11 }
 0x7a1   : > { %v1216_v14 = vsub.f32 %v1203_v7, %v1214_v13  ;;  %v1217_v15 = vmul.f32 %v1215_v12, %v1215_v12 }
 0x7a3   : > { %v1219_v16 = vsel %vm821_vm2, %v1217_v15, 0.0  ;;  %v1218_v33 = vmul.f32 %v1216_v14, %v1216_v14 }
 0x7a4   : > { %1220 = vadd.xlane.f32.xlu0 %v1219_v16 }
 0x7a5   : > { %v1222_v17 = vsel %vm821_vm2, %v1218_v33, 0.0 }
 0x7a8   : > { %1223 = vadd.xlane.f32.xlu0 %v1222_v17 }
 0x831   : > { %v1221_v19 = vpop.xlane.xlu0 %1220 }
 0x832   : > { %v1225_v20 = vmul.f32 0.03125, %v1221_v19 }
 0x834   : > { %v1227_v21 = vadd.f32 1e-12, %v1225_v20 }
 0x835   : > { %v1224_v22 = vpop.xlane.xlu0 %1223 }
 0x836   : > { %1890 = vrsqrt.f32 %v1227_v21  ;;  %v1226_v23 = vmul.f32 0.03125, %v1224_v22 }
 0x838   : > { %v1228_v24 = vadd.f32 1e-12, %v1226_v23 }
 0x83a   : > { %1892 = vrsqrt.f32 %v1228_v24 }
 0x840   : > { %v1891_v25 = vpop.eup %1890 }
 0x841   : > { %v1231_v26 = vmul.f32 %v1891_v25, %v1215_v12 }
 0x843   : > { %v1239_v29 = vmul.f32 %v1702_v27, %v1231_v26 }
 0x844   : > { %v1893_v28 = vpop.eup %1892 }
 0x845   : > { %v1232_v30 = vmul.f32 %v1893_v28, %v1216_v14  ;;  %v1247_v36 = vadd.f32 %v1703_v32, %v1239_v29 }
 0x847   : > { %v1240_v35 = vmul.f32 %v1702_v27, %v1232_v30  ;;  %v1714_v30 = vld [vmem:[%s731_s22] ss:$0 sm:$0xff] }
 0x849   : > { %v1248_v37 = vadd.f32 %v1703_v32, %v1240_v35 }
 0x84b   : > { %v1249_v38 = vpack.c.bf16 %v1248_v37, %v1247_v36 }
 0x84d   : > { %1792 = vmatmul.mubr.msk.bf16.vlgmr.msra.gmra.mrb[12].mxu0 %vm821_vm2, %v1249_v38 }
 0x920   : > { %v1310_v44 = vpop.f32.mrb[12].mxu0 }
 0x921   : > { %v1311_v45 = vadd.f32 %v1704_v43, %v1310_v44  ;;  %v1793_v46 = vpop.f32.mrb[13].mxu0 }
 0x922   : > { %v1313_v47 = vpop.f32.mrb[14].mxu0 }
 0x923   : > { %v1317_v48 = vmul.f32 %v1311_v45, %v1311_v45  ;;  %v1314_v49 = vadd.f32 %v1704_v43, %v1313_v47  ;;  %v1794_v50 = vpop.f32.mrb[15].mxu0 }
 0x925   : > { %v1319_v51 = vmul.f32 %v1317_v48, %v1311_v45  ;;  %v1318_v52 = vmul.f32 %v1314_v49, %v1314_v49 }
 0x927   : > { %v1321_v53 = vmul.f32 0.044715, %v1319_v51  ;;  %v1320_v54 = vmul.f32 %v1318_v52, %v1314_v49 }
 0x929   : > { %v1323_v55 = vadd.f32 %v1321_v53, %v1311_v45  ;;  %v1322_v31 = vmul.f32 0.044715, %v1320_v54 }
 0x92b   : > { %v1325_v56 = vmul.f32 0.7978846, %v1323_v55  ;;  %v1324_v57 = vadd.f32 %v1322_v31, %v1314_v49 }
 0x92d   : > { %1894 = vtanh.f32 %v1325_v56  ;;  %v1326_v58 = vmul.f32 0.7978846, %v1324_v57 }
 0x92f   : > { %1896 = vtanh.f32 %v1326_v58 }
 0x937   : > { %v1895_v59 = vpop.eup %1894 }
 0x938   : > { %v1329_v60 = vadd.f32 1.0, %v1895_v59 }
 0x939   : > { %v1897_v61 = vpop.eup %1896 }
 0x93a   : > { %v1331_v62 = vmul.f32 0.5, %v1329_v60  ;;  %v1330_v63 = vadd.f32 1.0, %v1897_v61 }
 0x93c   : > { %v1332_v0 = vmul.f32 0.5, %v1330_v63  ;;  %v1333_v1 = vmul.f32 %v1331_v62, %v1311_v45 }
 0x93e   : > { %v1334_v2 = vmul.f32 %v1332_v0, %v1314_v49 }
 0x940   : > { %v1335_v3 = vpack.c.bf16 %v1334_v2, %v1333_v1 }
 0x942   : > { %1804 = vmatmul.mubr.msk.bf16.vlgmr.msra.gmra.mrb[12].mxu1 %vm1375_vm4, %v1335_v3 }
 0xa15   : > { %v1413_v5 = vpop.f32.mrb[12].mxu1 }
 0xa16   : > { %v1414_v6 = vadd.f32 %v1708_v4, %v1413_v5  ;;  %v1805_v7 = vpop.f32.mrb[13].mxu1 }
 0xa17   : > { %v1416_v8 = vpop.f32.mrb[14].mxu1 }
 0xa18   : > { %v1417_v9 = vadd.f32 %v1708_v4, %v1416_v8  ;;  %v1806_v10 = vpop.f32.mrb[15].mxu1  ;;  %v1420_v11 = vadd.f32 %v1414_v6, %v1247_v36  ;;  %v1715_v36 = vld [vmem:[%s734_s10] ss:$0 sm:$0xff] }
 0xa1a   : > { %v1424_v12 = vsel %vm821_vm2, %v1420_v11, 0.0  ;;  %v1421_v13 = vadd.f32 %v1417_v9, %v1248_v37 }
 0xa1b   : > { %1425 = vadd.xlane.f32.xlu1 %v1424_v12 }
 0xa1c   : > { %v1427_v14 = vsel %vm821_vm2, %v1421_v13, 0.0 }
 0xa1d   : > { %1428 = vadd.xlane.f32.xlu0 %v1427_v14 }
 0xaa8   : > { %v1426_v15 = vpop.xlane.xlu1 %1425 }
 0xaa9   : > { %v1430_v16 = vmul.f32 0.03125, %v1426_v15 }
 0xaaa   : > { %v1429_v33 = vpop.xlane.xlu0 %1428 }
 0xaab   : > { %v1432_v17 = vsub.f32 %v1420_v11, %v1430_v16  ;;  %v1431_v34 = vmul.f32 0.03125, %v1429_v33 }
 0xaad   : > { %v1433_v18 = vsub.f32 %v1421_v13, %v1431_v34  ;;  %v1434_v19 = vmul.f32 %v1432_v17, %v1432_v17 }
 0xaaf   : > { %v1436_v20 = vsel %vm821_vm2, %v1434_v19, 0.0  ;;  %v1435_v21 = vmul.f32 %v1433_v18, %v1433_v18 }
 0xab0   : > { %1437 = vadd.xlane.f32.xlu1 %v1436_v20 }
 0xab1   : > { %v1439_v22 = vsel %vm821_vm2, %v1435_v21, 0.0 }
 0xab2   : > { %1440 = vadd.xlane.f32.xlu0 %v1439_v22 }
 0xb3d   : > { %v1438_v23 = vpop.xlane.xlu1 %1437 }
 0xb3e   : > { %v1442_v24 = vmul.f32 0.03125, %v1438_v23 }
 0xb3f   : > { %v1441_v25 = vpop.xlane.xlu0 %1440 }
 0xb40   : > { %v1444_v26 = vadd.f32 1e-12, %v1442_v24  ;;  %v1443_v27 = vmul.f32 0.03125, %v1441_v25 }
 0xb42   : > { %1898 = vrsqrt.f32 %v1444_v26  ;;  %v1445_v28 = vadd.f32 1e-12, %v1443_v27 }
 0xb44   : > { %1900 = vrsqrt.f32 %v1445_v28 }
 0xb4c   : > { %v1899_v29 = vpop.eup %1898 }
 0xb4d   : > { %v1448_v32 = vmul.f32 %v1899_v29, %v1432_v17 }
 0xb4e   : > { %v1901_v35 = vpop.eup %1900 }
 0xb4f   : > { %v1456_v37 = vmul.f32 %v1714_v30, %v1448_v32  ;;  %v1449_v38 = vmul.f32 %v1901_v35, %v1433_v18  ;;  %1471 = sbr.rel (%p1716_p8) target bundleno = 2902 (0xb56), region = 92 }
 0xb51   : > { %v1464_v39 = vadd.f32 %v1715_v36, %v1456_v37  ;;  %v1457_v40 = vmul.f32 %v1714_v30, %v1449_v38 }
 0xb53   : > { %1466 = vst.msk [vmem:[#allocation2] sm:$0xff] %vm821_vm2, %v1464_v39  ;;  %v1465_v41 = vadd.f32 %v1715_v36, %v1457_v40  ;;  %1472 = vst.msk [vmem:[%s2138_s11] sm:$0xff] (!%p1716_p8), %vm821_vm2, %v1464_v39 }
 0xb55   : > { %1467 = vst.msk [vmem:[#allocation2 + $0x8] sm:$0xff] %vm821_vm2, %v1465_v41  ;;  %1473 = vst.msk [vmem:[%s2138_s11 + $0x8] sm:$0xff] (!%p1716_p8), %vm821_vm2, %v1465_v41 }
 0xb56 PF: > { %s2364_s10 = sld [smem:[#allocation6_spill]]  ;;  %s2365_s21 = sld [smem:[#allocation4_spill]] }
 0xb57   : > { %s2366_s22 = sld [smem:[#allocation5_spill]]  ;;  %s2367_s23 = sld [smem:[#allocation7_spill]] }
 0xb58   : > { %s2368_s24 = sld [smem:[#allocation8_spill]] }
 0xb5c   : > { %s26_s25 = sadd.s32 1, %s2364_s10  }
 0xb5d   : > { %p23_p9 = scmp.ge.s32.totalorder %s26_s25, 10  }
 0xb5f   :  { %25 = sbr.rel (!%p23_p9) target bundleno = 11 (0xb), region = 161 }

</bundles_post_ra>
